<compile_context>
chip_gen: v7x
topology: tpu7x:2x2x1
jax: 0.10.0
libtpu: 0.0.40
codegen_flags: <defaults>
</compile_context>

<pallas_src>
import jax
import jax.numpy as jnp
from jax import lax
from jax.experimental import pallas as pl
from jax.experimental.pallas import tpu as pltpu


# ----------------------------- Pallas kernel -------------------------------

def _bigru_kernel(sched_ref,       # (T*2B, 1) int32 scheduled token ids
                  embed_ref,       # (V, D)   bf16 embedding table
                  wih_f_ref,       # (D, 3H)  bf16 input weights fwd  [r | z | n]
                  wih_b_ref,       # (D, 3H)  bf16 input weights bwd
                  bfold_f_ref,     # (1, 3H)  f32  [b_ir+b_hr, b_iz+b_hz, b_in] fwd
                  bfold_b_ref,     # (1, 3H)  f32  same, bwd
                  whh_f_ref,       # (H, 3H)  bf16 recurrent weights fwd
                  whh_b_ref,       # (H, 3H)  bf16 recurrent weights bwd
                  bhn_ref,         # (2B, H)  f32  n-gate hidden bias per direction block
                  h0_ref,          # (2B, H)  f32  initial hidden [fwd rows ; bwd rows]
                  wlab_f_ref,      # (H, C)   bf16 hidden2label weight, fwd half
                  wlab_b_ref,      # (H, C)   bf16 hidden2label weight, bwd half
                  blab_ref,        # (1, C)   f32
                  logit_ref,       # out (B, C)  f32
                  hidden_ref):     # out (2B, H) f32
    f32, bf16 = jnp.float32, jnp.bfloat16
    T2B = sched_ref.shape[0]
    V = embed_ref.shape[0]
    H = whh_f_ref.shape[0]
    B = logit_ref.shape[0]
    B2 = 2 * B
    T = T2B // B2

    # --- Prologue: one-hot gather of the scheduled embedding rows (one MXU
    # matmul, bounds-safe) and projection of ONLY those rows through each
    # direction's W_ih (r/z biases b_ih+b_hh and n-gate b_ih folded in).
    tok = sched_ref[...]                                         # (T2B, 1) int32
    vocab_iota = lax.broadcasted_iota(jnp.int32, (T2B, V), 1)
    onehot = (vocab_iota == tok).astype(bf16)                    # exact 0/1
    x = jnp.dot(onehot, embed_ref[...],
                preferred_element_type=f32)                      # (T2B, D) = gathered rows
    x16 = x.astype(bf16)                                         # exact (values already bf16)
    gi_f = jnp.dot(x16, wih_f_ref[...],
                   preferred_element_type=f32) + bfold_f_ref[...]
    gi_b = jnp.dot(x16, wih_b_ref[...],
                   preferred_element_type=f32) + bfold_b_ref[...]

    # Schedule row order: within each 2B-row step block, rows [0:B] are the
    # forward direction (token t), rows [B:2B] the backward one (token T-1-t).
    srow = lax.broadcasted_iota(jnp.int32, (T2B, 1), 0)
    sched_is_fwd = (srow % B2) < B
    gi = jnp.where(sched_is_fwd, gi_f, gi_b)                     # (T2B, 3H)
    # Pre-split per gate so only gh needs lane-offset slicing in the loop.
    gi_r = gi[:, 0:H]
    gi_z = gi[:, H:2 * H]
    gi_n = gi[:, 2 * H:3 * H]

    # --- Hoisted loop invariants.
    whh_f = whh_f_ref[...]                                       # (H, 3H) bf16
    whh_b = whh_b_ref[...]
    bhn = bhn_ref[...]                                           # (2B, H) f32
    row = lax.broadcasted_iota(jnp.int32, (B2, 1), 0)
    is_fwd = row < B                                             # (2B, 1) row mask

    h = h0_ref[...]                                              # (2B, H) f32 carry
    mx = jnp.full((B2, H), -jnp.inf, dtype=f32)                  # max-pool acc (T >= 1)

    # --- Recurrence: fully unrolled (T static); per step two tiny bf16 MXU
    # matmuls (f32 accumulate) + one hoisted row-mask select; gi slices static.
    for t in range(T):
        lo = t * B2
        h16 = h.astype(bf16)
        gh_f = jnp.dot(h16, whh_f, preferred_element_type=f32)   # (2B, 3H)
        gh_b = jnp.dot(h16, whh_b, preferred_element_type=f32)
        gh = jnp.where(is_fwd, gh_f, gh_b)
        # PyTorch gate order r, z, n; gi already carries the folded biases.
        r = jax.nn.sigmoid(gi_r[lo:lo + B2] + gh[:, 0:H])
        z = jax.nn.sigmoid(gi_z[lo:lo + B2] + gh[:, H:2 * H])
        n = jnp.tanh(gi_n[lo:lo + B2] + r * (gh[:, 2 * H:3 * H] + bhn))
        h = n + z * (h - n)                                      # (1-z)*n + z*h
        mx = jnp.maximum(mx, h)

    # --- Epilogue: max-pool over time already folded into mx; tanh then the
    # hidden2label linear with per-direction weight halves (no 2H concat).
    pooled = jnp.tanh(mx)                                        # (2B, H) f32
    p16 = pooled.astype(bf16)
    logits = (jnp.dot(p16[0:B], wlab_f_ref[...], preferred_element_type=f32)
              + jnp.dot(p16[B:B2], wlab_b_ref[...], preferred_element_type=f32)
              + blab_ref[...])                                   # (B, C)

    logit_ref[...] = logits.astype(logit_ref.dtype)
    hidden_ref[...] = h.astype(hidden_ref.dtype)                 # one (2B, H) slab


def bigru_forward(tokens, hidden, params):
    """tokens: (T, B) int32, hidden: (2, B, H).  Returns (logits (B,C), hidden (2,B,H))."""
    T, B = tokens.shape
    V, D = params["embed"].shape
    H = params["whh_f"].shape[0]
    C = params["wlab"].shape[1]
    f32, bf16 = jnp.float32, jnp.bfloat16

    # ---- parameter / index layout prep (pure plumbing; cached at load time).
    def fold_bias(bih, bhh):
        # r,z gates: b_ih + b_hh folded; n gate: b_ih only (b_hh_n stays inside r*(.)).
        return jnp.concatenate([bih[:, :2 * H] + bhh[:, :2 * H],
                                bih[:, 2 * H:]], axis=1)

    bfold_f = fold_bias(params["bih_f"], params["bhh_f"]).astype(f32)   # (1, 3H)
    bfold_b = fold_bias(params["bih_b"], params["bhh_b"]).astype(f32)   # (1, 3H)
    bhn_rows = jnp.concatenate(
        [jnp.broadcast_to(params["bhh_f"][:, 2 * H:], (B, H)),
         jnp.broadcast_to(params["bhh_b"][:, 2 * H:], (B, H))],
        axis=0).astype(f32)                                             # (2B, H)

    # Scheduled token ids in the kernel's row order: for step t, rows
    # [t*2B : t*2B+B] = forward tokens at time t, rows [t*2B+B : (t+1)*2B] =
    # backward tokens at time T-1-t.  (int32 index plumbing only; the actual
    # embedding gather happens inside the kernel via the one-hot matmul.)
    tok = tokens.astype(jnp.int32)
    sched = jnp.concatenate([tok, tok[::-1]], axis=1).reshape(T * 2 * B, 1)

    vmem = pl.BlockSpec(memory_space=pltpu.MemorySpace.VMEM)
    out_shape = (
        jax.ShapeDtypeStruct((B, C), f32),
        jax.ShapeDtypeStruct((2 * B, H), f32),
    )
    call = pl.pallas_call(
        _bigru_kernel,
        out_shape=out_shape,
        in_specs=[vmem] * 13,
        out_specs=(vmem, vmem),
    )
    logits, hidden_flat = call(
        sched,
        params["embed"].astype(bf16),
        params["wih_f"].astype(bf16), params["wih_b"].astype(bf16),
        bfold_f, bfold_b,
        params["whh_f"].astype(bf16), params["whh_b"].astype(bf16),
        bhn_rows,
        hidden.astype(f32).reshape(2 * B, H),
        params["wlab"][:H].astype(bf16), params["wlab"][H:].astype(bf16),
        params["blab"].astype(f32),
    )
    return logits, hidden_flat.reshape(2, B, H)


# ---------------------------- pure-JAX reference ----------------------------

def _ref_forward(tokens, hidden, params, mm_dtype=None):
    """Reference BiGRU forward.  mm_dtype=jnp.bfloat16 mirrors the kernel's
    bf16 MXU operands (f32 accumulation); mm_dtype=None is strict f32."""
    f32 = jnp.float32
    cast = (lambda a: a.astype(mm_dtype)) if mm_dtype is not None else (lambda a: a)

    def mm(a, b):
        return jnp.dot(cast(a), cast(b), preferred_element_type=f32)

    H = params["whh_f"].shape[0]
    x = cast(params["embed"])[tokens].astype(f32)          # (T, B, D)

    def cell(h, x_t, wih, whh, bih, bhh):
        gi = mm(x_t, wih) + bih
        gh = mm(h, whh) + bhh
        r = jax.nn.sigmoid(gi[:, :H] + gh[:, :H])
        z = jax.nn.sigmoid(gi[:, H:2 * H] + gh[:, H:2 * H])
        n = jnp.tanh(gi[:, 2 * H:] + r * gh[:, 2 * H:])
        return (1.0 - z) * n + z * h

    def scan_dir(xs, h0, wih, whh, bih, bhh):
        def step(h, x_t):
            h = cell(h, x_t, wih, whh, bih, bhh)
            return h, h
        _, hs = lax.scan(step, h0, xs)
        return hs                                           # (T, B, H)

    hf = scan_dir(x, hidden[0], params["wih_f"], params["whh_f"],
                  params["bih_f"], params["bhh_f"])
    hb_rev = scan_dir(x[::-1], hidden[1], params["wih_b"], params["whh_b"],
                      params["bih_b"], params["bhh_b"])
    hb = hb_rev[::-1]                                       # aligned by t
    gru_out = jnp.concatenate([hf, hb], axis=-1)            # (T, B, 2H)
    pooled = jnp.tanh(jnp.max(gru_out, axis=0))             # (B, 2H)
    logits = mm(pooled, params["wlab"]) + params["blab"]
    hidden_out = jnp.stack([hf[-1], hb_rev[-1]], axis=0)
    return logits, hidden_out


# --------------------------------- main -------------------------------------

def _init_params(key, V, D, H, C):
    ks = jax.random.split(key, 12)
    k = 1.0 / jnp.sqrt(jnp.float32(H))
    u = lambda kk, shape, s: jax.random.uniform(kk, shape, jnp.float32, -s, s)
    return {
        "embed": jax.random.normal(ks[0], (V, D), jnp.float32) * 0.1,
        "wih_f": u(ks[1], (D, 3 * H), k),
        "whh_f": u(ks[2], (H, 3 * H), k),
        "bih_f": u(ks[3], (1, 3 * H), k),
        "bhh_f": u(ks[4], (1, 3 * H), k),
        "wih_b": u(ks[5], (D, 3 * H), k),
        "whh_b": u(ks[6], (H, 3 * H), k),
        "bih_b": u(ks[7], (1, 3 * H), k),
        "bhh_b": u(ks[8], (1, 3 * H), k),
        "wlab":  u(ks[9], (2 * H, C), 1.0 / jnp.sqrt(jnp.float32(2 * H))),
        "blab":  u(ks[10], (1, C), 1.0 / jnp.sqrt(jnp.float32(2 * H))),
    }


if __name__ == "__main__":
    # Small shapes consistent with the module's forward pass.
    T, B = 8, 2          # seq_len, batch
    V, D = 50, 16        # embed_num, embed_dim
    H = 32               # lstm_hidden_dim
    C = 4                # class_num
    NUM_LAYERS = 1       # lstm_num_layers

    key = jax.random.PRNGKey(0)
    kp, kt = jax.random.split(key)
    params = _init_params(kp, V, D, H, C)

    tokens = jax.random.randint(kt, (T, B), 0, V, dtype=jnp.int32)
    hidden0 = jnp.zeros((2 * NUM_LAYERS, B, H), jnp.float32)   # init_hidden

    fwd = jax.jit(bigru_forward)
    logits, hidden_out = fwd(tokens, hidden0, params)
    jax.block_until_ready((logits, hidden_out))

    assert logits.shape == (B, C) and hidden_out.shape == (2, B, H)

    # Tight numerical check: reference that also rounds matmul operands to bf16
    # (matches the kernel's MXU operand precision; f32 accumulation in both).
    ref_l16, ref_h16 = _ref_forward(tokens, hidden0, params, mm_dtype=jnp.bfloat16)
    assert jnp.allclose(logits, ref_l16, atol=1e-3, rtol=1e-3)
    assert jnp.allclose(hidden_out, ref_h16, atol=1e-3, rtol=1e-3)

    # Semantic check against the strict f32 reference; tolerance sized for the
    # bf16 MXU operands used on the recurrent path.
    ref_l32, ref_h32 = _ref_forward(tokens, hidden0, params)
    assert jnp.allclose(logits, ref_l32, atol=5e-2, rtol=5e-2)
    assert jnp.allclose(hidden_out, ref_h32, atol=5e-2, rtol=5e-2)

    print("KERNEL_OK")
</pallas_src>

<mosaic_0001>
module attributes {stable_mosaic.version = 11 : i64} {
  func.func @_bigru_kernel(%arg0: memref<32x1xi32, #tpu.memory_space<vmem>>, %arg1: memref<50x16xbf16, #tpu.memory_space<vmem>>, %arg2: memref<16x96xbf16, #tpu.memory_space<vmem>>, %arg3: memref<16x96xbf16, #tpu.memory_space<vmem>>, %arg4: memref<1x96xf32, #tpu.memory_space<vmem>>, %arg5: memref<1x96xf32, #tpu.memory_space<vmem>>, %arg6: memref<32x96xbf16, #tpu.memory_space<vmem>>, %arg7: memref<32x96xbf16, #tpu.memory_space<vmem>>, %arg8: memref<4x32xf32, #tpu.memory_space<vmem>>, %arg9: memref<4x32xf32, #tpu.memory_space<vmem>>, %arg10: memref<32x4xbf16, #tpu.memory_space<vmem>>, %arg11: memref<32x4xbf16, #tpu.memory_space<vmem>>, %arg12: memref<1x4xf32, #tpu.memory_space<vmem>>, %arg13: memref<2x4xf32, #tpu.memory_space<vmem>>, %arg14: memref<4x32xf32, #tpu.memory_space<vmem>>) attributes {dimension_semantics = [], scalar_prefetch = 0 : i64, scratch_operands = 0 : i64, tpu.core_type = #tpu.core_type<tc>} {
    %c0 = arith.constant 0 : index
    %c0_0 = arith.constant 0 : index
    %0 = vector.load %arg0[%c0, %c0_0] : memref<32x1xi32, #tpu.memory_space<vmem>>, vector<32x1xi32>
    %1 = tpu.iota {dimensions = array<i32: 1>} : vector<32x50xi32>
    %2 = vector.broadcast %0 : vector<32x1xi32> to vector<32x50xi32>
    %3 = arith.cmpi eq, %1, %2 : vector<32x50xi32>
    %4 = arith.extui %3 : vector<32x50xi1> to vector<32x50xi32>
    %5 = arith.sitofp %4 : vector<32x50xi32> to vector<32x50xf32>
    %6 = arith.truncf %5 : vector<32x50xf32> to vector<32x50xbf16>
    %c0_1 = arith.constant 0 : index
    %c0_2 = arith.constant 0 : index
    %7 = vector.load %arg1[%c0_1, %c0_2] : memref<50x16xbf16, #tpu.memory_space<vmem>>, vector<50x16xbf16>
    %cst = arith.constant dense<0.000000e+00> : vector<32x16xf32>
    %8 = tpu.matmul %6, %7, %cst {dimension_numbers = #tpu.dot_dimension_numbers<[1], [0], [0], [1], [0, 0, 1, 1], [], []>} : vector<32x50xbf16>, vector<50x16xbf16>, vector<32x16xf32> -> vector<32x16xf32>
    %9 = arith.truncf %8 : vector<32x16xf32> to vector<32x16xbf16>
    %c0_3 = arith.constant 0 : index
    %c0_4 = arith.constant 0 : index
    %10 = vector.load %arg2[%c0_3, %c0_4] : memref<16x96xbf16, #tpu.memory_space<vmem>>, vector<16x96xbf16>
    %cst_5 = arith.constant dense<0.000000e+00> : vector<32x96xf32>
    %11 = tpu.matmul %9, %10, %cst_5 {dimension_numbers = #tpu.dot_dimension_numbers<[1], [0], [0], [1], [0, 0, 1, 1], [], []>} : vector<32x16xbf16>, vector<16x96xbf16>, vector<32x96xf32> -> vector<32x96xf32>
    %c0_6 = arith.constant 0 : index
    %c0_7 = arith.constant 0 : index
    %12 = vector.load %arg4[%c0_6, %c0_7] : memref<1x96xf32, #tpu.memory_space<vmem>>, vector<1x96xf32>
    %13 = vector.broadcast %12 : vector<1x96xf32> to vector<32x96xf32>
    %14 = arith.addf %11, %13 : vector<32x96xf32>
    %c0_8 = arith.constant 0 : index
    %c0_9 = arith.constant 0 : index
    %15 = vector.load %arg3[%c0_8, %c0_9] : memref<16x96xbf16, #tpu.memory_space<vmem>>, vector<16x96xbf16>
    %cst_10 = arith.constant dense<0.000000e+00> : vector<32x96xf32>
    %16 = tpu.matmul %9, %15, %cst_10 {dimension_numbers = #tpu.dot_dimension_numbers<[1], [0], [0], [1], [0, 0, 1, 1], [], []>} : vector<32x16xbf16>, vector<16x96xbf16>, vector<32x96xf32> -> vector<32x96xf32>
    %c0_11 = arith.constant 0 : index
    %c0_12 = arith.constant 0 : index
    %17 = vector.load %arg5[%c0_11, %c0_12] : memref<1x96xf32, #tpu.memory_space<vmem>>, vector<1x96xf32>
    %18 = vector.broadcast %17 : vector<1x96xf32> to vector<32x96xf32>
    %19 = arith.addf %16, %18 : vector<32x96xf32>
    %20 = tpu.iota {dimensions = array<i32: 0>} : vector<32x1xi32>
    %c4_i32 = arith.constant 4 : i32
    %c0_i32 = arith.constant 0 : i32
    %21 = arith.cmpi eq, %c4_i32, %c0_i32 : i32
    %c1_i32 = arith.constant 1 : i32
    %22 = arith.select %21, %c1_i32, %c4_i32 : i32
    %23 = vector.broadcast %22 : i32 to vector<32x1xi32>
    %24 = arith.remsi %20, %23 : vector<32x1xi32>
    %c0_i32_13 = arith.constant 0 : i32
    %25 = vector.broadcast %c0_i32_13 : i32 to vector<32x1xi32>
    %26 = arith.cmpi ne, %24, %25 : vector<32x1xi32>
    %c0_i32_14 = arith.constant 0 : i32
    %27 = vector.broadcast %c0_i32_14 : i32 to vector<32x1xi32>
    %28 = arith.cmpi slt, %24, %27 : vector<32x1xi32>
    %c0_i32_15 = arith.constant 0 : i32
    %29 = arith.cmpi slt, %22, %c0_i32_15 : i32
    %30 = vector.broadcast %29 : i1 to vector<32x1xi1>
    %31 = vector.broadcast %30 : vector<32x1xi1> to vector<32x1xi1>
    %32 = arith.xori %28, %31 : vector<32x1xi1>
    %33 = arith.andi %32, %26 : vector<32x1xi1>
    %34 = vector.broadcast %22 : i32 to vector<32x1xi32>
    %35 = arith.addi %24, %34 : vector<32x1xi32>
    %36 = arith.select %33, %35, %24 : vector<32x1xi1>, vector<32x1xi32>
    %c2_i32 = arith.constant 2 : i32
    %37 = vector.broadcast %c2_i32 : i32 to vector<32x1xi32>
    %38 = arith.cmpi slt, %36, %37 : vector<32x1xi32>
    %39 = vector.shape_cast %38 : vector<32x1xi1> to vector<32x1xi1>
    %40 = vector.broadcast %39 : vector<32x1xi1> to vector<32x96xi1>
    %41 = arith.select %40, %14, %19 : vector<32x96xi1>, vector<32x96xf32>
    %42 = vector.extract_strided_slice %41 {offsets = [0, 0], sizes = [32, 32], strides = [1, 1]} : vector<32x96xf32> to vector<32x32xf32>
    %43 = vector.extract_strided_slice %41 {offsets = [0, 32], sizes = [32, 32], strides = [1, 1]} : vector<32x96xf32> to vector<32x32xf32>
    %44 = vector.extract_strided_slice %41 {offsets = [0, 64], sizes = [32, 32], strides = [1, 1]} : vector<32x96xf32> to vector<32x32xf32>
    %c0_16 = arith.constant 0 : index
    %c0_17 = arith.constant 0 : index
    %45 = vector.load %arg6[%c0_16, %c0_17] : memref<32x96xbf16, #tpu.memory_space<vmem>>, vector<32x96xbf16>
    %c0_18 = arith.constant 0 : index
    %c0_19 = arith.constant 0 : index
    %46 = vector.load %arg7[%c0_18, %c0_19] : memref<32x96xbf16, #tpu.memory_space<vmem>>, vector<32x96xbf16>
    %c0_20 = arith.constant 0 : index
    %c0_21 = arith.constant 0 : index
    %47 = vector.load %arg8[%c0_20, %c0_21] : memref<4x32xf32, #tpu.memory_space<vmem>>, vector<4x32xf32>
    %48 = tpu.iota {dimensions = array<i32: 0>} : vector<4x1xi32>
    %c2_i32_22 = arith.constant 2 : i32
    %49 = vector.broadcast %c2_i32_22 : i32 to vector<4x1xi32>
    %50 = arith.cmpi slt, %48, %49 : vector<4x1xi32>
    %c0_23 = arith.constant 0 : index
    %c0_24 = arith.constant 0 : index
    %51 = vector.load %arg9[%c0_23, %c0_24] : memref<4x32xf32, #tpu.memory_space<vmem>>, vector<4x32xf32>
    %cst_25 = arith.constant 0xFF800000 : f32
    %52 = vector.broadcast %cst_25 : f32 to vector<4x32xf32>
    %53 = arith.truncf %51 : vector<4x32xf32> to vector<4x32xbf16>
    %cst_26 = arith.constant dense<0.000000e+00> : vector<4x96xf32>
    %54 = tpu.matmul %53, %45, %cst_26 {dimension_numbers = #tpu.dot_dimension_numbers<[1], [0], [0], [1], [0, 0, 1, 1], [], []>} : vector<4x32xbf16>, vector<32x96xbf16>, vector<4x96xf32> -> vector<4x96xf32>
    %cst_27 = arith.constant dense<0.000000e+00> : vector<4x96xf32>
    %55 = tpu.matmul %53, %46, %cst_27 {dimension_numbers = #tpu.dot_dimension_numbers<[1], [0], [0], [1], [0, 0, 1, 1], [], []>} : vector<4x32xbf16>, vector<32x96xbf16>, vector<4x96xf32> -> vector<4x96xf32>
    %56 = vector.shape_cast %50 : vector<4x1xi1> to vector<4x1xi1>
    %57 = vector.broadcast %56 : vector<4x1xi1> to vector<4x96xi1>
    %58 = arith.select %57, %54, %55 : vector<4x96xi1>, vector<4x96xf32>
    %59 = vector.extract_strided_slice %42 {offsets = [0, 0], sizes = [4, 32], strides = [1, 1]} : vector<32x32xf32> to vector<4x32xf32>
    %60 = vector.extract_strided_slice %58 {offsets = [0, 0], sizes = [4, 32], strides = [1, 1]} : vector<4x96xf32> to vector<4x32xf32>
    %61 = arith.addf %59, %60 : vector<4x32xf32>
    %62 = arith.negf %61 : vector<4x32xf32>
    %63 = math.exp %62 : vector<4x32xf32>
    %cst_28 = arith.constant 1.000000e+00 : f32
    %64 = vector.broadcast %cst_28 : f32 to vector<4x32xf32>
    %65 = arith.addf %64, %63 : vector<4x32xf32>
    %66 = arith.divf %64, %65 : vector<4x32xf32>
    %67 = vector.extract_strided_slice %43 {offsets = [0, 0], sizes = [4, 32], strides = [1, 1]} : vector<32x32xf32> to vector<4x32xf32>
    %68 = vector.extract_strided_slice %58 {offsets = [0, 32], sizes = [4, 32], strides = [1, 1]} : vector<4x96xf32> to vector<4x32xf32>
    %69 = arith.addf %67, %68 : vector<4x32xf32>
    %70 = arith.negf %69 : vector<4x32xf32>
    %71 = math.exp %70 : vector<4x32xf32>
    %cst_29 = arith.constant 1.000000e+00 : f32
    %72 = vector.broadcast %cst_29 : f32 to vector<4x32xf32>
    %73 = arith.addf %72, %71 : vector<4x32xf32>
    %74 = arith.divf %72, %73 : vector<4x32xf32>
    %75 = vector.extract_strided_slice %44 {offsets = [0, 0], sizes = [4, 32], strides = [1, 1]} : vector<32x32xf32> to vector<4x32xf32>
    %76 = vector.extract_strided_slice %58 {offsets = [0, 64], sizes = [4, 32], strides = [1, 1]} : vector<4x96xf32> to vector<4x32xf32>
    %77 = arith.addf %76, %47 : vector<4x32xf32>
    %78 = arith.mulf %66, %77 : vector<4x32xf32>
    %79 = arith.addf %75, %78 : vector<4x32xf32>
    %80 = math.tanh %79 : vector<4x32xf32>
    %81 = arith.subf %51, %80 : vector<4x32xf32>
    %82 = arith.mulf %74, %81 : vector<4x32xf32>
    %83 = arith.addf %80, %82 : vector<4x32xf32>
    %84 = arith.maximumf %52, %83 : vector<4x32xf32>
    %85 = arith.truncf %83 : vector<4x32xf32> to vector<4x32xbf16>
    %cst_30 = arith.constant dense<0.000000e+00> : vector<4x96xf32>
    %86 = tpu.matmul %85, %45, %cst_30 {dimension_numbers = #tpu.dot_dimension_numbers<[1], [0], [0], [1], [0, 0, 1, 1], [], []>} : vector<4x32xbf16>, vector<32x96xbf16>, vector<4x96xf32> -> vector<4x96xf32>
    %cst_31 = arith.constant dense<0.000000e+00> : vector<4x96xf32>
    %87 = tpu.matmul %85, %46, %cst_31 {dimension_numbers = #tpu.dot_dimension_numbers<[1], [0], [0], [1], [0, 0, 1, 1], [], []>} : vector<4x32xbf16>, vector<32x96xbf16>, vector<4x96xf32> -> vector<4x96xf32>
    %88 = vector.shape_cast %50 : vector<4x1xi1> to vector<4x1xi1>
    %89 = vector.broadcast %88 : vector<4x1xi1> to vector<4x96xi1>
    %90 = arith.select %89, %86, %87 : vector<4x96xi1>, vector<4x96xf32>
    %91 = vector.extract_strided_slice %42 {offsets = [4, 0], sizes = [4, 32], strides = [1, 1]} : vector<32x32xf32> to vector<4x32xf32>
    %92 = vector.extract_strided_slice %90 {offsets = [0, 0], sizes = [4, 32], strides = [1, 1]} : vector<4x96xf32> to vector<4x32xf32>
    %93 = arith.addf %91, %92 : vector<4x32xf32>
    %94 = arith.negf %93 : vector<4x32xf32>
    %95 = math.exp %94 : vector<4x32xf32>
    %cst_32 = arith.constant 1.000000e+00 : f32
    %96 = vector.broadcast %cst_32 : f32 to vector<4x32xf32>
    %97 = arith.addf %96, %95 : vector<4x32xf32>
    %98 = arith.divf %96, %97 : vector<4x32xf32>
    %99 = vector.extract_strided_slice %43 {offsets = [4, 0], sizes = [4, 32], strides = [1, 1]} : vector<32x32xf32> to vector<4x32xf32>
    %100 = vector.extract_strided_slice %90 {offsets = [0, 32], sizes = [4, 32], strides = [1, 1]} : vector<4x96xf32> to vector<4x32xf32>
    %101 = arith.addf %99, %100 : vector<4x32xf32>
    %102 = arith.negf %101 : vector<4x32xf32>
    %103 = math.exp %102 : vector<4x32xf32>
    %cst_33 = arith.constant 1.000000e+00 : f32
    %104 = vector.broadcast %cst_33 : f32 to vector<4x32xf32>
    %105 = arith.addf %104, %103 : vector<4x32xf32>
    %106 = arith.divf %104, %105 : vector<4x32xf32>
    %107 = vector.extract_strided_slice %44 {offsets = [4, 0], sizes = [4, 32], strides = [1, 1]} : vector<32x32xf32> to vector<4x32xf32>
    %108 = vector.extract_strided_slice %90 {offsets = [0, 64], sizes = [4, 32], strides = [1, 1]} : vector<4x96xf32> to vector<4x32xf32>
    %109 = arith.addf %108, %47 : vector<4x32xf32>
    %110 = arith.mulf %98, %109 : vector<4x32xf32>
    %111 = arith.addf %107, %110 : vector<4x32xf32>
    %112 = math.tanh %111 : vector<4x32xf32>
    %113 = arith.subf %83, %112 : vector<4x32xf32>
    %114 = arith.mulf %106, %113 : vector<4x32xf32>
    %115 = arith.addf %112, %114 : vector<4x32xf32>
    %116 = arith.maximumf %84, %115 : vector<4x32xf32>
    %117 = arith.truncf %115 : vector<4x32xf32> to vector<4x32xbf16>
    %cst_34 = arith.constant dense<0.000000e+00> : vector<4x96xf32>
    %118 = tpu.matmul %117, %45, %cst_34 {dimension_numbers = #tpu.dot_dimension_numbers<[1], [0], [0], [1], [0, 0, 1, 1], [], []>} : vector<4x32xbf16>, vector<32x96xbf16>, vector<4x96xf32> -> vector<4x96xf32>
    %cst_35 = arith.constant dense<0.000000e+00> : vector<4x96xf32>
    %119 = tpu.matmul %117, %46, %cst_35 {dimension_numbers = #tpu.dot_dimension_numbers<[1], [0], [0], [1], [0, 0, 1, 1], [], []>} : vector<4x32xbf16>, vector<32x96xbf16>, vector<4x96xf32> -> vector<4x96xf32>
    %120 = vector.shape_cast %50 : vector<4x1xi1> to vector<4x1xi1>
    %121 = vector.broadcast %120 : vector<4x1xi1> to vector<4x96xi1>
    %122 = arith.select %121, %118, %119 : vector<4x96xi1>, vector<4x96xf32>
    %123 = vector.extract_strided_slice %42 {offsets = [8, 0], sizes = [4, 32], strides = [1, 1]} : vector<32x32xf32> to vector<4x32xf32>
    %124 = vector.extract_strided_slice %122 {offsets = [0, 0], sizes = [4, 32], strides = [1, 1]} : vector<4x96xf32> to vector<4x32xf32>
    %125 = arith.addf %123, %124 : vector<4x32xf32>
    %126 = arith.negf %125 : vector<4x32xf32>
    %127 = math.exp %126 : vector<4x32xf32>
    %cst_36 = arith.constant 1.000000e+00 : f32
    %128 = vector.broadcast %cst_36 : f32 to vector<4x32xf32>
    %129 = arith.addf %128, %127 : vector<4x32xf32>
    %130 = arith.divf %128, %129 : vector<4x32xf32>
    %131 = vector.extract_strided_slice %43 {offsets = [8, 0], sizes = [4, 32], strides = [1, 1]} : vector<32x32xf32> to vector<4x32xf32>
    %132 = vector.extract_strided_slice %122 {offsets = [0, 32], sizes = [4, 32], strides = [1, 1]} : vector<4x96xf32> to vector<4x32xf32>
    %133 = arith.addf %131, %132 : vector<4x32xf32>
    %134 = arith.negf %133 : vector<4x32xf32>
    %135 = math.exp %134 : vector<4x32xf32>
    %cst_37 = arith.constant 1.000000e+00 : f32
    %136 = vector.broadcast %cst_37 : f32 to vector<4x32xf32>
    %137 = arith.addf %136, %135 : vector<4x32xf32>
    %138 = arith.divf %136, %137 : vector<4x32xf32>
    %139 = vector.extract_strided_slice %44 {offsets = [8, 0], sizes = [4, 32], strides = [1, 1]} : vector<32x32xf32> to vector<4x32xf32>
    %140 = vector.extract_strided_slice %122 {offsets = [0, 64], sizes = [4, 32], strides = [1, 1]} : vector<4x96xf32> to vector<4x32xf32>
    %141 = arith.addf %140, %47 : vector<4x32xf32>
    %142 = arith.mulf %130, %141 : vector<4x32xf32>
    %143 = arith.addf %139, %142 : vector<4x32xf32>
    %144 = math.tanh %143 : vector<4x32xf32>
    %145 = arith.subf %115, %144 : vector<4x32xf32>
    %146 = arith.mulf %138, %145 : vector<4x32xf32>
    %147 = arith.addf %144, %146 : vector<4x32xf32>
    %148 = arith.maximumf %116, %147 : vector<4x32xf32>
    %149 = arith.truncf %147 : vector<4x32xf32> to vector<4x32xbf16>
    %cst_38 = arith.constant dense<0.000000e+00> : vector<4x96xf32>
    %150 = tpu.matmul %149, %45, %cst_38 {dimension_numbers = #tpu.dot_dimension_numbers<[1], [0], [0], [1], [0, 0, 1, 1], [], []>} : vector<4x32xbf16>, vector<32x96xbf16>, vector<4x96xf32> -> vector<4x96xf32>
    %cst_39 = arith.constant dense<0.000000e+00> : vector<4x96xf32>
    %151 = tpu.matmul %149, %46, %cst_39 {dimension_numbers = #tpu.dot_dimension_numbers<[1], [0], [0], [1], [0, 0, 1, 1], [], []>} : vector<4x32xbf16>, vector<32x96xbf16>, vector<4x96xf32> -> vector<4x96xf32>
    %152 = vector.shape_cast %50 : vector<4x1xi1> to vector<4x1xi1>
    %153 = vector.broadcast %152 : vector<4x1xi1> to vector<4x96xi1>
    %154 = arith.select %153, %150, %151 : vector<4x96xi1>, vector<4x96xf32>
    %155 = vector.extract_strided_slice %42 {offsets = [12, 0], sizes = [4, 32], strides = [1, 1]} : vector<32x32xf32> to vector<4x32xf32>
    %156 = vector.extract_strided_slice %154 {offsets = [0, 0], sizes = [4, 32], strides = [1, 1]} : vector<4x96xf32> to vector<4x32xf32>
    %157 = arith.addf %155, %156 : vector<4x32xf32>
    %158 = arith.negf %157 : vector<4x32xf32>
    %159 = math.exp %158 : vector<4x32xf32>
    %cst_40 = arith.constant 1.000000e+00 : f32
    %160 = vector.broadcast %cst_40 : f32 to vector<4x32xf32>
    %161 = arith.addf %160, %159 : vector<4x32xf32>
    %162 = arith.divf %160, %161 : vector<4x32xf32>
    %163 = vector.extract_strided_slice %43 {offsets = [12, 0], sizes = [4, 32], strides = [1, 1]} : vector<32x32xf32> to vector<4x32xf32>
    %164 = vector.extract_strided_slice %154 {offsets = [0, 32], sizes = [4, 32], strides = [1, 1]} : vector<4x96xf32> to vector<4x32xf32>
    %165 = arith.addf %163, %164 : vector<4x32xf32>
    %166 = arith.negf %165 : vector<4x32xf32>
    %167 = math.exp %166 : vector<4x32xf32>
    %cst_41 = arith.constant 1.000000e+00 : f32
    %168 = vector.broadcast %cst_41 : f32 to vector<4x32xf32>
    %169 = arith.addf %168, %167 : vector<4x32xf32>
    %170 = arith.divf %168, %169 : vector<4x32xf32>
    %171 = vector.extract_strided_slice %44 {offsets = [12, 0], sizes = [4, 32], strides = [1, 1]} : vector<32x32xf32> to vector<4x32xf32>
    %172 = vector.extract_strided_slice %154 {offsets = [0, 64], sizes = [4, 32], strides = [1, 1]} : vector<4x96xf32> to vector<4x32xf32>
    %173 = arith.addf %172, %47 : vector<4x32xf32>
    %174 = arith.mulf %162, %173 : vector<4x32xf32>
    %175 = arith.addf %171, %174 : vector<4x32xf32>
    %176 = math.tanh %175 : vector<4x32xf32>
    %177 = arith.subf %147, %176 : vector<4x32xf32>
    %178 = arith.mulf %170, %177 : vector<4x32xf32>
    %179 = arith.addf %176, %178 : vector<4x32xf32>
    %180 = arith.maximumf %148, %179 : vector<4x32xf32>
    %181 = arith.truncf %179 : vector<4x32xf32> to vector<4x32xbf16>
    %cst_42 = arith.constant dense<0.000000e+00> : vector<4x96xf32>
    %182 = tpu.matmul %181, %45, %cst_42 {dimension_numbers = #tpu.dot_dimension_numbers<[1], [0], [0], [1], [0, 0, 1, 1], [], []>} : vector<4x32xbf16>, vector<32x96xbf16>, vector<4x96xf32> -> vector<4x96xf32>
    %cst_43 = arith.constant dense<0.000000e+00> : vector<4x96xf32>
    %183 = tpu.matmul %181, %46, %cst_43 {dimension_numbers = #tpu.dot_dimension_numbers<[1], [0], [0], [1], [0, 0, 1, 1], [], []>} : vector<4x32xbf16>, vector<32x96xbf16>, vector<4x96xf32> -> vector<4x96xf32>
    %184 = vector.shape_cast %50 : vector<4x1xi1> to vector<4x1xi1>
    %185 = vector.broadcast %184 : vector<4x1xi1> to vector<4x96xi1>
    %186 = arith.select %185, %182, %183 : vector<4x96xi1>, vector<4x96xf32>
    %187 = vector.extract_strided_slice %42 {offsets = [16, 0], sizes = [4, 32], strides = [1, 1]} : vector<32x32xf32> to vector<4x32xf32>
    %188 = vector.extract_strided_slice %186 {offsets = [0, 0], sizes = [4, 32], strides = [1, 1]} : vector<4x96xf32> to vector<4x32xf32>
    %189 = arith.addf %187, %188 : vector<4x32xf32>
    %190 = arith.negf %189 : vector<4x32xf32>
    %191 = math.exp %190 : vector<4x32xf32>
    %cst_44 = arith.constant 1.000000e+00 : f32
    %192 = vector.broadcast %cst_44 : f32 to vector<4x32xf32>
    %193 = arith.addf %192, %191 : vector<4x32xf32>
    %194 = arith.divf %192, %193 : vector<4x32xf32>
    %195 = vector.extract_strided_slice %43 {offsets = [16, 0], sizes = [4, 32], strides = [1, 1]} : vector<32x32xf32> to vector<4x32xf32>
    %196 = vector.extract_strided_slice %186 {offsets = [0, 32], sizes = [4, 32], strides = [1, 1]} : vector<4x96xf32> to vector<4x32xf32>
    %197 = arith.addf %195, %196 : vector<4x32xf32>
    %198 = arith.negf %197 : vector<4x32xf32>
    %199 = math.exp %198 : vector<4x32xf32>
    %cst_45 = arith.constant 1.000000e+00 : f32
    %200 = vector.broadcast %cst_45 : f32 to vector<4x32xf32>
    %201 = arith.addf %200, %199 : vector<4x32xf32>
    %202 = arith.divf %200, %201 : vector<4x32xf32>
    %203 = vector.extract_strided_slice %44 {offsets = [16, 0], sizes = [4, 32], strides = [1, 1]} : vector<32x32xf32> to vector<4x32xf32>
    %204 = vector.extract_strided_slice %186 {offsets = [0, 64], sizes = [4, 32], strides = [1, 1]} : vector<4x96xf32> to vector<4x32xf32>
    %205 = arith.addf %204, %47 : vector<4x32xf32>
    %206 = arith.mulf %194, %205 : vector<4x32xf32>
    %207 = arith.addf %203, %206 : vector<4x32xf32>
    %208 = math.tanh %207 : vector<4x32xf32>
    %209 = arith.subf %179, %208 : vector<4x32xf32>
    %210 = arith.mulf %202, %209 : vector<4x32xf32>
    %211 = arith.addf %208, %210 : vector<4x32xf32>
    %212 = arith.maximumf %180, %211 : vector<4x32xf32>
    %213 = arith.truncf %211 : vector<4x32xf32> to vector<4x32xbf16>
    %cst_46 = arith.constant dense<0.000000e+00> : vector<4x96xf32>
    %214 = tpu.matmul %213, %45, %cst_46 {dimension_numbers = #tpu.dot_dimension_numbers<[1], [0], [0], [1], [0, 0, 1, 1], [], []>} : vector<4x32xbf16>, vector<32x96xbf16>, vector<4x96xf32> -> vector<4x96xf32>
    %cst_47 = arith.constant dense<0.000000e+00> : vector<4x96xf32>
    %215 = tpu.matmul %213, %46, %cst_47 {dimension_numbers = #tpu.dot_dimension_numbers<[1], [0], [0], [1], [0, 0, 1, 1], [], []>} : vector<4x32xbf16>, vector<32x96xbf16>, vector<4x96xf32> -> vector<4x96xf32>
    %216 = vector.shape_cast %50 : vector<4x1xi1> to vector<4x1xi1>
    %217 = vector.broadcast %216 : vector<4x1xi1> to vector<4x96xi1>
    %218 = arith.select %217, %214, %215 : vector<4x96xi1>, vector<4x96xf32>
    %219 = vector.extract_strided_slice %42 {offsets = [20, 0], sizes = [4, 32], strides = [1, 1]} : vector<32x32xf32> to vector<4x32xf32>
    %220 = vector.extract_strided_slice %218 {offsets = [0, 0], sizes = [4, 32], strides = [1, 1]} : vector<4x96xf32> to vector<4x32xf32>
    %221 = arith.addf %219, %220 : vector<4x32xf32>
    %222 = arith.negf %221 : vector<4x32xf32>
    %223 = math.exp %222 : vector<4x32xf32>
    %cst_48 = arith.constant 1.000000e+00 : f32
    %224 = vector.broadcast %cst_48 : f32 to vector<4x32xf32>
    %225 = arith.addf %224, %223 : vector<4x32xf32>
    %226 = arith.divf %224, %225 : vector<4x32xf32>
    %227 = vector.extract_strided_slice %43 {offsets = [20, 0], sizes = [4, 32], strides = [1, 1]} : vector<32x32xf32> to vector<4x32xf32>
    %228 = vector.extract_strided_slice %218 {offsets = [0, 32], sizes = [4, 32], strides = [1, 1]} : vector<4x96xf32> to vector<4x32xf32>
    %229 = arith.addf %227, %228 : vector<4x32xf32>
    %230 = arith.negf %229 : vector<4x32xf32>
    %231 = math.exp %230 : vector<4x32xf32>
    %cst_49 = arith.constant 1.000000e+00 : f32
    %232 = vector.broadcast %cst_49 : f32 to vector<4x32xf32>
    %233 = arith.addf %232, %231 : vector<4x32xf32>
    %234 = arith.divf %232, %233 : vector<4x32xf32>
    %235 = vector.extract_strided_slice %44 {offsets = [20, 0], sizes = [4, 32], strides = [1, 1]} : vector<32x32xf32> to vector<4x32xf32>
    %236 = vector.extract_strided_slice %218 {offsets = [0, 64], sizes = [4, 32], strides = [1, 1]} : vector<4x96xf32> to vector<4x32xf32>
    %237 = arith.addf %236, %47 : vector<4x32xf32>
    %238 = arith.mulf %226, %237 : vector<4x32xf32>
    %239 = arith.addf %235, %238 : vector<4x32xf32>
    %240 = math.tanh %239 : vector<4x32xf32>
    %241 = arith.subf %211, %240 : vector<4x32xf32>
    %242 = arith.mulf %234, %241 : vector<4x32xf32>
    %243 = arith.addf %240, %242 : vector<4x32xf32>
    %244 = arith.maximumf %212, %243 : vector<4x32xf32>
    %245 = arith.truncf %243 : vector<4x32xf32> to vector<4x32xbf16>
    %cst_50 = arith.constant dense<0.000000e+00> : vector<4x96xf32>
    %246 = tpu.matmul %245, %45, %cst_50 {dimension_numbers = #tpu.dot_dimension_numbers<[1], [0], [0], [1], [0, 0, 1, 1], [], []>} : vector<4x32xbf16>, vector<32x96xbf16>, vector<4x96xf32> -> vector<4x96xf32>
    %cst_51 = arith.constant dense<0.000000e+00> : vector<4x96xf32>
    %247 = tpu.matmul %245, %46, %cst_51 {dimension_numbers = #tpu.dot_dimension_numbers<[1], [0], [0], [1], [0, 0, 1, 1], [], []>} : vector<4x32xbf16>, vector<32x96xbf16>, vector<4x96xf32> -> vector<4x96xf32>
    %248 = vector.shape_cast %50 : vector<4x1xi1> to vector<4x1xi1>
    %249 = vector.broadcast %248 : vector<4x1xi1> to vector<4x96xi1>
    %250 = arith.select %249, %246, %247 : vector<4x96xi1>, vector<4x96xf32>
    %251 = vector.extract_strided_slice %42 {offsets = [24, 0], sizes = [4, 32], strides = [1, 1]} : vector<32x32xf32> to vector<4x32xf32>
    %252 = vector.extract_strided_slice %250 {offsets = [0, 0], sizes = [4, 32], strides = [1, 1]} : vector<4x96xf32> to vector<4x32xf32>
    %253 = arith.addf %251, %252 : vector<4x32xf32>
    %254 = arith.negf %253 : vector<4x32xf32>
    %255 = math.exp %254 : vector<4x32xf32>
    %cst_52 = arith.constant 1.000000e+00 : f32
    %256 = vector.broadcast %cst_52 : f32 to vector<4x32xf32>
    %257 = arith.addf %256, %255 : vector<4x32xf32>
    %258 = arith.divf %256, %257 : vector<4x32xf32>
    %259 = vector.extract_strided_slice %43 {offsets = [24, 0], sizes = [4, 32], strides = [1, 1]} : vector<32x32xf32> to vector<4x32xf32>
    %260 = vector.extract_strided_slice %250 {offsets = [0, 32], sizes = [4, 32], strides = [1, 1]} : vector<4x96xf32> to vector<4x32xf32>
    %261 = arith.addf %259, %260 : vector<4x32xf32>
    %262 = arith.negf %261 : vector<4x32xf32>
    %263 = math.exp %262 : vector<4x32xf32>
    %cst_53 = arith.constant 1.000000e+00 : f32
    %264 = vector.broadcast %cst_53 : f32 to vector<4x32xf32>
    %265 = arith.addf %264, %263 : vector<4x32xf32>
    %266 = arith.divf %264, %265 : vector<4x32xf32>
    %267 = vector.extract_strided_slice %44 {offsets = [24, 0], sizes = [4, 32], strides = [1, 1]} : vector<32x32xf32> to vector<4x32xf32>
    %268 = vector.extract_strided_slice %250 {offsets = [0, 64], sizes = [4, 32], strides = [1, 1]} : vector<4x96xf32> to vector<4x32xf32>
    %269 = arith.addf %268, %47 : vector<4x32xf32>
    %270 = arith.mulf %258, %269 : vector<4x32xf32>
    %271 = arith.addf %267, %270 : vector<4x32xf32>
    %272 = math.tanh %271 : vector<4x32xf32>
    %273 = arith.subf %243, %272 : vector<4x32xf32>
    %274 = arith.mulf %266, %273 : vector<4x32xf32>
    %275 = arith.addf %272, %274 : vector<4x32xf32>
    %276 = arith.maximumf %244, %275 : vector<4x32xf32>
    %277 = arith.truncf %275 : vector<4x32xf32> to vector<4x32xbf16>
    %cst_54 = arith.constant dense<0.000000e+00> : vector<4x96xf32>
    %278 = tpu.matmul %277, %45, %cst_54 {dimension_numbers = #tpu.dot_dimension_numbers<[1], [0], [0], [1], [0, 0, 1, 1], [], []>} : vector<4x32xbf16>, vector<32x96xbf16>, vector<4x96xf32> -> vector<4x96xf32>
    %cst_55 = arith.constant dense<0.000000e+00> : vector<4x96xf32>
    %279 = tpu.matmul %277, %46, %cst_55 {dimension_numbers = #tpu.dot_dimension_numbers<[1], [0], [0], [1], [0, 0, 1, 1], [], []>} : vector<4x32xbf16>, vector<32x96xbf16>, vector<4x96xf32> -> vector<4x96xf32>
    %280 = vector.shape_cast %50 : vector<4x1xi1> to vector<4x1xi1>
    %281 = vector.broadcast %280 : vector<4x1xi1> to vector<4x96xi1>
    %282 = arith.select %281, %278, %279 : vector<4x96xi1>, vector<4x96xf32>
    %283 = vector.extract_strided_slice %42 {offsets = [28, 0], sizes = [4, 32], strides = [1, 1]} : vector<32x32xf32> to vector<4x32xf32>
    %284 = vector.extract_strided_slice %282 {offsets = [0, 0], sizes = [4, 32], strides = [1, 1]} : vector<4x96xf32> to vector<4x32xf32>
    %285 = arith.addf %283, %284 : vector<4x32xf32>
    %286 = arith.negf %285 : vector<4x32xf32>
    %287 = math.exp %286 : vector<4x32xf32>
    %cst_56 = arith.constant 1.000000e+00 : f32
    %288 = vector.broadcast %cst_56 : f32 to vector<4x32xf32>
    %289 = arith.addf %288, %287 : vector<4x32xf32>
    %290 = arith.divf %288, %289 : vector<4x32xf32>
    %291 = vector.extract_strided_slice %43 {offsets = [28, 0], sizes = [4, 32], strides = [1, 1]} : vector<32x32xf32> to vector<4x32xf32>
    %292 = vector.extract_strided_slice %282 {offsets = [0, 32], sizes = [4, 32], strides = [1, 1]} : vector<4x96xf32> to vector<4x32xf32>
    %293 = arith.addf %291, %292 : vector<4x32xf32>
    %294 = arith.negf %293 : vector<4x32xf32>
    %295 = math.exp %294 : vector<4x32xf32>
    %cst_57 = arith.constant 1.000000e+00 : f32
    %296 = vector.broadcast %cst_57 : f32 to vector<4x32xf32>
    %297 = arith.addf %296, %295 : vector<4x32xf32>
    %298 = arith.divf %296, %297 : vector<4x32xf32>
    %299 = vector.extract_strided_slice %44 {offsets = [28, 0], sizes = [4, 32], strides = [1, 1]} : vector<32x32xf32> to vector<4x32xf32>
    %300 = vector.extract_strided_slice %282 {offsets = [0, 64], sizes = [4, 32], strides = [1, 1]} : vector<4x96xf32> to vector<4x32xf32>
    %301 = arith.addf %300, %47 : vector<4x32xf32>
    %302 = arith.mulf %290, %301 : vector<4x32xf32>
    %303 = arith.addf %299, %302 : vector<4x32xf32>
    %304 = math.tanh %303 : vector<4x32xf32>
    %305 = arith.subf %275, %304 : vector<4x32xf32>
    %306 = arith.mulf %298, %305 : vector<4x32xf32>
    %307 = arith.addf %304, %306 : vector<4x32xf32>
    %308 = arith.maximumf %276, %307 : vector<4x32xf32>
    %309 = math.tanh %308 : vector<4x32xf32>
    %310 = arith.truncf %309 : vector<4x32xf32> to vector<4x32xbf16>
    %311 = vector.extract_strided_slice %310 {offsets = [0, 0], sizes = [2, 32], strides = [1, 1]} : vector<4x32xbf16> to vector<2x32xbf16>
    %c0_58 = arith.constant 0 : index
    %c0_59 = arith.constant 0 : index
    %312 = vector.load %arg10[%c0_58, %c0_59] : memref<32x4xbf16, #tpu.memory_space<vmem>>, vector<32x4xbf16>
    %cst_60 = arith.constant dense<0.000000e+00> : vector<2x4xf32>
    %313 = tpu.matmul %311, %312, %cst_60 {dimension_numbers = #tpu.dot_dimension_numbers<[1], [0], [0], [1], [0, 0, 1, 1], [], []>} : vector<2x32xbf16>, vector<32x4xbf16>, vector<2x4xf32> -> vector<2x4xf32>
    %314 = vector.extract_strided_slice %310 {offsets = [2, 0], sizes = [2, 32], strides = [1, 1]} : vector<4x32xbf16> to vector<2x32xbf16>
    %c0_61 = arith.constant 0 : index
    %c0_62 = arith.constant 0 : index
    %315 = vector.load %arg11[%c0_61, %c0_62] : memref<32x4xbf16, #tpu.memory_space<vmem>>, vector<32x4xbf16>
    %cst_63 = arith.constant dense<0.000000e+00> : vector<2x4xf32>
    %316 = tpu.matmul %314, %315, %cst_63 {dimension_numbers = #tpu.dot_dimension_numbers<[1], [0], [0], [1], [0, 0, 1, 1], [], []>} : vector<2x32xbf16>, vector<32x4xbf16>, vector<2x4xf32> -> vector<2x4xf32>
    %317 = arith.addf %313, %316 : vector<2x4xf32>
    %c0_64 = arith.constant 0 : index
    %c0_65 = arith.constant 0 : index
    %318 = vector.load %arg12[%c0_64, %c0_65] : memref<1x4xf32, #tpu.memory_space<vmem>>, vector<1x4xf32>
    %319 = vector.broadcast %318 : vector<1x4xf32> to vector<2x4xf32>
    %320 = arith.addf %317, %319 : vector<2x4xf32>
    %c0_66 = arith.constant 0 : index
    %c0_67 = arith.constant 0 : index
    %321 = vector.load %arg13[%c0_66, %c0_67] : memref<2x4xf32, #tpu.memory_space<vmem>>, vector<2x4xf32>
    tpu.vector_store %arg13[%c0_66, %c0_67], %320 {strides = array<i32>} : memref<2x4xf32, #tpu.memory_space<vmem>>, vector<2x4xf32>,
    %c0_68 = arith.constant 0 : index
    %c0_69 = arith.constant 0 : index
    %322 = vector.load %arg14[%c0_68, %c0_69] : memref<4x32xf32, #tpu.memory_space<vmem>>, vector<4x32xf32>
    tpu.vector_store %arg14[%c0_68, %c0_69], %307 {strides = array<i32>} : memref<4x32xf32, #tpu.memory_space<vmem>>, vector<4x32xf32>,
    return
  }
}

</mosaic_0001>

<bundles_post_ra>
// kernel: bigru_forward.1
= control target key start
LH: loop header
LB: loop body
LE: loop exit
PB: predicated region body
PF: predicated region fallthrough
CT: control target
= control target key end

     0   :  { %20 = vsyncpa [#allocation3], 0  ;;  %v2007_v2 = vmov 0   ;;  %vm116_vm0 = vcmask 1040384   ;;  %s2467_s0 = inlined_call_operand.vmem [shape: s32[32,1], index: 0, kind: input, shape index: {}]   ;;  %s2468_s1 = inlined_call_operand.vmem [shape: bf16[50,16], index: 1, kind: input, shape index: {}]   ;;  %s2469_s2 = inlined_call_operand.vmem [shape: bf16[16,96], index: 2, kind: input, shape index: {}]   ;;  %s2470_s3 = inlined_call_operand.vmem [shape: bf16[16,96], index: 3, kind: input, shape index: {}]   ;;  %s2471_s4 = inlined_call_operand.vmem [shape: f32[1,96], index: 4, kind: input, shape index: {}]   ;;  %s2472_s5 = inlined_call_operand.vmem [shape: f32[1,96], index: 5, kind: input, shape index: {}]   ;;  %s2473_s6 = inlined_call_operand.vmem [shape: bf16[32,96], index: 6, kind: input, shape index: {}]   ;;  %s2474_s7 = inlined_call_operand.vmem [shape: bf16[32,96], index: 7, kind: input, shape index: {}]   ;;  %s2475_s8 = inlined_call_operand.vmem [shape: f32[4,32], index: 8, kind: input, shape index: {}]   ;;  %s2476_s9 = inlined_call_operand.vmem [shape: f32[4,32], index: 9, kind: input, shape index: {}]   ;;  %s2477_s10 = inlined_call_operand.vmem [shape: bf16[32,4], index: 10, kind: input, shape index: {}]   ;;  %s2478_s11 = inlined_call_operand.vmem [shape: bf16[32,4], index: 11, kind: input, shape index: {}]   ;;  %s2479_s12 = inlined_call_operand.vmem [shape: f32[1,4], index: 12, kind: input, shape index: {}]   ;;  %s2480_s13 = inlined_call_operand.hbm [shape: f32[2,4], index: 13, kind: output, shape index: {0}]   ;;  %s2481_s14 = inlined_call_operand.hbm [shape: f32[4,32], index: 14, kind: output, shape index: {1}]  }
   0x1   :  { %v51_v0 = vld [vmem:[%s2467_s0 + $0x10] sm:$0xff]  ;;  %v49_v1 = vld [vmem:[%s2467_s0] sm:$0xff]  ;;  %1894 = vset.pattern.permute.xlu1 %v2007_v2  ;;  %1893 = vset.pattern.permute.xlu0 %v2007_v2  ;;  %v52_v3 = vld [vmem:[%s2467_s0 + $0x18] sm:$0xff] }
   0x2   :  { %v50_v4 = vld [vmem:[%s2467_s0 + $0x8] sm:$0xff]  ;;  %62 = vperm.xlu1 %1894, %v51_v0   ;;  %56 = vperm.xlu0 %1893, %v49_v1   ;;  %v1895_v5 = vld [vmem:[%s2468_s1] sm:$0xff]   ;;  %v1897_v7 = vld [vmem:[%s2468_s1 + $0x10] sm:$0xff]  }
   0x3   :  { %v1896_v6 = vld [vmem:[%s2468_s1 + $0x8] sm:$0xff]   ;;  %1716 = vmatprep.subr.bf16.mxu0 %v1895_v5  ;;  %v1898_v8 = vld [vmem:[%s2468_s1 + $0x18] ss:$0 sps:$4 sm:$0x11]  }
   0x4   :  { %1717 = vmatpush3.bf16.msra.mxu0 %v1895_v5 }
   0x5   :  { %1718 = vmatprep.subr.bf16.mxu0 %v1896_v6 }
   0x6   :  { %65 = vperm.xlu1 %1894, %v52_v3   ;;  %59 = vperm.xlu0 %1893, %v50_v4  }
   0x8   :  { %1719 = vmatpush3.bf16.msra.mxu0 %v1896_v6 }
   0x9   :  { %1720 = vmatprep.subr.bf16.mxu0 %v1897_v7 }
   0xc   :  { %1721 = vmatpush3.bf16.msra.mxu0 %v1897_v7 }
   0xd   :  { %21 = vsyncpa [#allocation5], 0  ;;  %1884 = vmatprep.subr.msk.bf16.mxu0 %vm116_vm0, %v1898_v8  ;;  %v118_v9 = vsel %vm116_vm0, %v1898_v8, 0  ;;  %v2008_v10 = vmov 0.0   ;;  %v53_v11 = vlaneseq  ;;  %vm109_vm5 = vcmask 408576   ;;  %v1899_v23 = vld [vmem:[%s2469_s2] sm:$0xff]  }
   0xe   :  { %1728 = vmatprep.subr.bf16.mxu1 %v1899_v23  ;;  %v1900_v24 = vld [vmem:[%s2470_s3] sm:$0xff]   ;;  %v2136_v26 = vld [vmem:[%s2474_s7 + $0x8] sm:$0xff]   ;;  %vm2009_vm6 = vmmov 0   ;;  %vm399_vm7 = vcmask 261120   ;;  %vm186_vm8 = vcmask 130048   ;;  %vm1567_vm14 = vcmask 261124  }
   0xf   :  { %v54_v12 = vand.u32 127, %v53_v11  ;;  %1729 = vmatpush3.bf16.msra.mxu1 %v1899_v23  ;;  %v2129_v25 = vld [vmem:[%s2474_s7] sm:$0xff]   ;;  %v2170_v37 = vld [vmem:[%s2473_s6 + $0x8] sm:$0xff]   ;;  %v2185_v42 = vshrl.u32 %v53_v11, 7 }
  0x10   :  { %1723 = vmatpush3.bf16.msra.mxu0 %v118_v9  ;;  %1734 = vmatprep.subr.bf16.mxu1 %v1900_v24  ;;  %v2142_v27 = vld [vmem:[%s2476_s9] sm:$0xf]  ;;  %s2010_s9 = smov 64  }
  0x11   :  { %1748 = vmatprep.subr.bf16.mxu0 %v2008_v10  ;;  %v386_v28 = vpack.c.bf16 %v2142_v27, %v2142_v27  ;;  %v383_v29 = vld [vmem:[%s2475_s8] sm:$0xf]  ;;  %v309_v45 = vadd.s32 16, %v2185_v42  ;;  %v310_v49 = vadd.s32 24, %v2185_v42  ;;  %v308_v52 = vadd.s32 8, %v2185_v42 }
  0x12   :  { %506 = vrot.lane.b32.xlu0 %v383_v29, %s2010_s9  ;;  %v2164_v36 = vld [vmem:[%s2473_s6] sm:$0xff]   ;;  %v315_v55 = vand.u32 3, %v2185_v42  ;;  %vm384_vm13 = vcmp.lt.s32.totalorder %v2185_v42, 2 }
  0x13   :  { %v1607_v43 = vld [vmem:[%s2471_s4] ss:$0 sm:$0xff]  ;;  %v329_v54 = vand.u32 3, %v309_v45  ;;  %v336_v57 = vand.u32 3, %v310_v49  ;;  %v322_v58 = vand.u32 3, %v308_v52  ;;  %s2011_s4 = smov 32  }
  0x14   :  { %v1611_v56 = vld [vmem:[%s2472_s5] ss:$0 sm:$0xff]  ;;  %vm359_vm10 = vcmp.lt.s32.totalorder %v315_v55, 2  ;;  %s2012_s5 = smov 96  }
  0x15   :  { %vm361_vm9 = vcmp.lt.s32.totalorder %v329_v54, 2  ;;  %vm362_vm11 = vcmp.lt.s32.totalorder %v336_v57, 2  ;;  %vm360_vm12 = vcmp.lt.s32.totalorder %v322_v58, 2 }
  0x81   :  { %v63_v13 = vpop.permute.xlu1 %62  ;;  %v57_v14 = vpop.permute.xlu0 %56 }
  0x82   :  { %vm69_vm1 = vcmp.eq.s32.totalorder %v54_v12, %v63_v13  ;;  %vm67_vm2 = vcmp.eq.s32.totalorder %v54_v12, %v57_v14 }
  0x83   :  { %v1599_v17 = vsel %vm69_vm1, 1.0, %v2008_v10  ;;  %v1597_v18 = vsel %vm67_vm2, 1.0, %v2008_v10 }
  0x85   :  { %v66_v15 = vpop.permute.xlu1 %65  ;;  %v60_v16 = vpop.permute.xlu0 %59 }
  0x86   :  { %vm70_vm3 = vcmp.eq.s32.totalorder %v54_v12, %v66_v15  ;;  %vm68_vm4 = vcmp.eq.s32.totalorder %v54_v12, %v60_v16 }
  0x87   :  { %v1600_v19 = vsel %vm70_vm3, 1.0, %v2008_v10  ;;  %v1598_v20 = vsel %vm68_vm4, 1.0, %v2008_v10 }
  0x88   :  { %v80_v21 = vpack.c.bf16 %v1600_v19, %v1599_v17  ;;  %v79_v22 = vpack.c.bf16 %v1598_v20, %v1597_v18 }
  0x89   :  { %v2206_v8 = vpop.permute.xlu0 %506 }
  0x8a   :  { %1724 = vmatprep.mubr.msk.bf16.mxu0 %vm109_vm5, %v79_v22 }
  0x8b   :  { %1725 = vmatmul.mubr.msk.bf16.vlgmr.msra.gmra.mrb[0].mxu0 %vm109_vm5, %v80_v21 }
  0x8c   :  { %1749 = vmatpush3.bf16.msra.mxu0 %v2129_v25  ;;  %1752 = vmatprep.mubr.msk.bf16.mxu0 %vm2009_vm6, %v2008_v10 }
  0x8d   :  { %1750 = vmatprep.subr.bf16.mxu0 %v2008_v10 }
  0x90   :  { %1751 = vmatpush3.bf16.msra.mxu0 %v2136_v26 }
  0x91   :  { %1764 = vmatprep.subr.bf16.mxu0 %v2008_v10 }
  0x93   :  { %1753 = vmatmul.mubr.msk.bf16.vlgmr.msra.gmra.mrb[4].mxu0 %vm399_vm7, %v386_v28 }
  0x94   :  { %1765 = vmatpush3.bf16.msra.mxu0 %v2129_v25  ;;  %1768 = vmatprep.mubr.msk.bf16.mxu0 %vm2009_vm6, %v2008_v10 }
  0x95   :  { %1766 = vmatprep.subr.bf16.mxu0 %v2008_v10 }
  0x98   :  { %1767 = vmatpush3.bf16.msra.mxu0 %v2136_v26 }
  0x99   :  { %1780 = vmatprep.subr.bf16.mxu0 %v2008_v10 }
 0x15e   :  { %v1726_v30 = vpop.f32.mrb[0].mxu0 }
 0x15f   :  { %v154_v31 = vpop.f32.mrb[1].mxu0 }
 0x160   :  { %v1727_v32 = vpop.f32.mrb[2].mxu0 }
 0x161   :  { %v170_v33 = vpack.c.bf16 %v1727_v32, %v1726_v30  ;;  %v157_v34 = vpop.f32.mrb[3].mxu0 }
 0x162   :  { %v169_v35 = vpack.c.bf16 %v157_v34, %v154_v31 }
 0x164   :  { %1730 = vmatprep.mubr.msk.bf16.mxu1 %vm186_vm8, %v169_v35 }
 0x165   :  { %1731 = vmatmul.mubr.msk.bf16.vlgmr.msra.gmra.mrb[0].mxu1 %vm186_vm8, %v170_v33 }
 0x166   :  { %1735 = vmatpush3.bf16.msra.mxu1 %v1900_v24  ;;  %1736 = vmatprep.mubr.msk.bf16.mxu1 %vm186_vm8, %v169_v35  ;;  %v489_v38 = vpop.f32.mrb[4].mxu0 }
 0x167   :  { %1740 = vmatprep.subr.bf16.mxu1 %v2008_v10  ;;  %v1754_v39 = vpop.f32.mrb[5].mxu0 }
 0x168   :  { %v492_v40 = vpop.f32.mrb[6].mxu0 }
 0x169   :  { %v1755_v41 = vpop.f32.mrb[7].mxu0 }
 0x16d   :  { %1737 = vmatmul.mubr.msk.bf16.vlgmr.msra.gmra.mrb[4].mxu1 %vm186_vm8, %v170_v33 }
 0x16e   :  { %1741 = vmatpush3.bf16.msra.mxu1 %v2164_v36  ;;  %1744 = vmatprep.mubr.msk.bf16.mxu1 %vm2009_vm6, %v2008_v10 }
 0x16f   :  { %1742 = vmatprep.subr.bf16.mxu1 %v2008_v10 }
 0x172   :  { %1743 = vmatpush3.bf16.msra.mxu1 %v2170_v37 }
 0x173   :  { %1756 = vmatprep.subr.bf16.mxu1 %v2008_v10 }
 0x175   :  { %1745 = vmatmul.mubr.msk.bf16.vlgmr.msra.gmra.mrb[8].mxu1 %vm399_vm7, %v386_v28 }
 0x176   :  { %1757 = vmatpush3.bf16.msra.mxu1 %v2164_v36  ;;  %1760 = vmatprep.mubr.msk.bf16.mxu1 %vm2009_vm6, %v2008_v10 }
 0x177   :  { %1758 = vmatprep.subr.bf16.mxu1 %v2008_v10 }
 0x17a   :  { %1759 = vmatpush3.bf16.msra.mxu1 %v2170_v37 }
 0x17b   :  { %1772 = vmatprep.subr.bf16.mxu1 %v2008_v10 }
 0x238   :  { %v1732_v44 = vpop.f32.mrb[0].mxu1 }
 0x239   :  { %v236_v46 = vadd.f32 %v1732_v44, %v1607_v43  ;;  %v227_v47 = vpop.f32.mrb[1].mxu1 }
 0x23a   :  { %v1733_v48 = vpop.f32.mrb[2].mxu1  ;;  %v228_v62 = vadd.f32 %v1607_v43, %v227_v47 }
 0x23b   :  { %v239_v50 = vadd.f32 %v1733_v48, %v1607_v43  ;;  %v230_v51 = vpop.f32.mrb[3].mxu1 }
 0x23c   :  { %v231_v53 = vadd.f32 %v1607_v43, %v230_v51 }
 0x240   :  { %v1738_v59 = vpop.f32.mrb[4].mxu1 }
 0x241   :  { %v300_v60 = vadd.f32 %v1738_v59, %v1611_v56  ;;  %v291_v61 = vpop.f32.mrb[5].mxu1 }
 0x242   :  { %v292_v63 = vadd.f32 %v1611_v56, %v291_v61  ;;  %v1739_v0 = vpop.f32.mrb[6].mxu1 }
 0x243   :  { %v2197_v1 = vsel %vm361_vm9, %v236_v46, %v300_v60  ;;  %v303_v2 = vadd.f32 %v1739_v0, %v1611_v56  ;;  %v294_v3 = vpop.f32.mrb[7].mxu1 }
 0x244   :  { %v2199_v4 = vsel %vm359_vm10, %v228_v62, %v292_v63  ;;  %v295_v5 = vadd.f32 %v1611_v56, %v294_v3 }
 0x245   :  { %v2201_v6 = vsel %vm362_vm11, %v239_v50, %v303_v2 }
 0x246   :  { %v2203_v7 = vsel %vm360_vm12, %v231_v53, %v295_v5 }
 0x248   :  { %v437_v9 = vpop.f32.mrb[8].mxu1 }
 0x249   :  { %v497_v11 = vsel %vm384_vm13, %v437_v9, %v489_v38  ;;  %v1746_v12 = vpop.f32.mrb[9].mxu1 }
 0x24a   :  { %v440_v13 = vpop.f32.mrb[10].mxu1  ;;  %v509_v14 = vadd.f32 %v2206_v8, %v497_v11  ;;  %v498_v16 = vadd.f32 %v497_v11, %v2199_v4 }
 0x24b   :  { %v1747_v15 = vpop.f32.mrb[11].mxu1 }
 0x24c   :  { %511 = vrot.lane.b32.xlu1 %v509_v14, %s2010_s9  ;;  %v1621_v17 = vmul.f32 -1.442695, %v498_v16 }
 0x24e   :  { %1909 = vpow2.f32 %v1621_v17 }
 0x258   :  { %v1910_v18 = vpop.eup %1909 }
 0x259   :  { %v502_v19 = vadd.f32 1.0, %v1910_v18 }
 0x25b   :  { %1911 = vrcp.f32 %v502_v19 }
 0x265   :  { %v1912_v20 = vpop.eup %1911 }
 0x2be   :  { %v512_v21 = vpop.permute.xlu1 %511 }
 0x2bf   :  { %v514_v22 = vmul.f32 %v1912_v20, %v512_v21 }
 0x2c1   :  { %516 = vrot.lane.b32.xlu0 %v514_v22, %s2010_s9 }
 0x333   :  { %v517_v23 = vpop.permute.xlu0 %516 }
 0x334   :  { %v519_v24 = vadd.f32 %v517_v23, %v2199_v4 }
 0x336   :  { %1913 = vtanh.f32 %v519_v24 }
 0x340   :  { %v1914_v28 = vpop.eup %1913 }
 0x341   :  { %522 = vrot.lane.b32.xlu1 %v1914_v28, %s2010_s9 }
 0x3b3   :  { %v523_v29 = vpop.permute.xlu1 %522 }
 0x3b4   :  { %v525_v30 = vsub.f32 %v2142_v27, %v523_v29 }
 0x3b6   :  { %527 = vrot.lane.b32.xlu0 %v525_v30, %s2011_s4 }
 0x428   :  { %v528_v31 = vpop.permute.xlu0 %527 }
 0x429   :  { %v530_v32 = vmul.f32 %v1912_v20, %v528_v31 }
 0x42b   :  { %532 = vrot.lane.b32.xlu1 %v530_v32, %s2011_s4 }
 0x49d   :  { %v533_v33 = vpop.permute.xlu1 %532 }
 0x49e   :  { %v2219_v34 = vadd.f32 %v1914_v28, %v533_v33 }
 0x4a0   :  { %v536_v35 = vpack.c.bf16 %v2219_v34, %v2219_v34 }
 0x4a2   :  { %538 = vrot.lane.b32.xlu0 %v536_v35, %s2010_s9 }
 0x514   :  { %v539_v38 = vpop.permute.xlu0 %538 }
 0x515   :  { %1761 = vmatmul.mubr.msk.bf16.vlgmr.msra.gmra.mrb[12].mxu1 %vm399_vm7, %v539_v38  ;;  %1769 = vmatmul.mubr.msk.bf16.vlgmr.msra.gmra.mrb[8].mxu0 %vm399_vm7, %v539_v38 }
 0x516   :  { %1773 = vmatpush3.bf16.msra.mxu1 %v2164_v36  ;;  %1781 = vmatpush3.bf16.msra.mxu0 %v2129_v25 }
 0x517   :  { %1774 = vmatprep.subr.bf16.mxu1 %v2008_v10  ;;  %1782 = vmatprep.subr.bf16.mxu0 %v2008_v10 }
 0x518   :  { %1776 = vmatprep.mubr.msk.bf16.mxu1 %vm2009_vm6, %v2008_v10  ;;  %1784 = vmatprep.mubr.msk.bf16.mxu0 %vm2009_vm6, %v2008_v10 }
 0x51a   :  { %1775 = vmatpush3.bf16.msra.mxu1 %v2170_v37  ;;  %1783 = vmatpush3.bf16.msra.mxu0 %v2136_v26 }
 0x51b   :  { %1788 = vmatprep.subr.bf16.mxu1 %v2008_v10  ;;  %1796 = vmatprep.subr.bf16.mxu0 %v2008_v10 }
 0x5e8   :  { %v577_v27 = vpop.f32.mrb[12].mxu1  ;;  %v617_v39 = vpop.f32.mrb[8].mxu0 }
 0x5e9   :  { %v623_v40 = vsel %vm384_vm13, %v577_v27, %v617_v39  ;;  %v1762_v41 = vpop.f32.mrb[13].mxu1  ;;  %v1770_v43 = vpop.f32.mrb[9].mxu0 }
 0x5ea   :  { %v634_v44 = vadd.f32 %v623_v40, %v2206_v8  ;;  %v580_v45 = vpop.f32.mrb[14].mxu1  ;;  %v620_v46 = vpop.f32.mrb[10].mxu0  ;;  %v625_v50 = vrot.slane %v623_v40, 4 }
 0x5eb   :  { %v1763_v47 = vpop.f32.mrb[15].mxu1  ;;  %v1771_v48 = vpop.f32.mrb[11].mxu0 }
 0x5ec   :  { %v636_v49 = vrot.slane %v634_v44, 4  ;;  %v627_v51 = vadd.f32 %v625_v50, %v2199_v4 }
 0x5ee   :  { %637 = vrot.lane.b32.xlu1 %v636_v49, %s2010_s9  ;;  %v1624_v52 = vmul.f32 -1.442695, %v627_v51 }
 0x5f0   :  { %1915 = vpow2.f32 %v1624_v52 }
 0x5fa   :  { %v1916_v53 = vpop.eup %1915 }
 0x5fb   :  { %v631_v54 = vadd.f32 1.0, %v1916_v53 }
 0x5fd   :  { %1917 = vrcp.f32 %v631_v54 }
 0x607   :  { %v1918_v55 = vpop.eup %1917 }
 0x660   :  { %v638_v56 = vpop.permute.xlu1 %637 }
 0x661   :  { %v640_v57 = vmul.f32 %v1918_v55, %v638_v56 }
 0x663   :  { %642 = vrot.lane.b32.xlu0 %v640_v57, %s2010_s9 }
 0x6d5   :  { %v643_v58 = vpop.permute.xlu0 %642 }
 0x6d6   :  { %v645_v59 = vadd.f32 %v643_v58, %v2199_v4 }
 0x6d8   :  { %1919 = vtanh.f32 %v645_v59 }
 0x6e2   :  { %v1920_v60 = vpop.eup %1919 }
 0x6e3   :  { %v648_v61 = vrot.slane %v1920_v60, 4 }
 0x6e5   :  { %v650_v62 = vsub.f32 %v2219_v34, %v648_v61 }
 0x6e7   :  { %v652_v63 = vrot.slane %v650_v62, 4 }
 0x6e9   :  { %653 = vrot.lane.b32.xlu1 %v652_v63, %s2012_s5 }
 0x75b   :  { %v654_v0 = vpop.permute.xlu1 %653 }
 0x75c   :  { %v656_v2 = vmul.f32 %v1918_v55, %v654_v0 }
 0x75e   :  { %658 = vrot.lane.b32.xlu0 %v656_v2, %s2011_s4 }
 0x7d0   :  { %v659_v3 = vpop.permute.xlu0 %658 }
 0x7d1   :  { %v2248_v5 = vadd.f32 %v1920_v60, %v659_v3 }
 0x7d3   :  { %v666_v9 = vpack.c.bf16 %v2248_v5, %v2248_v5 }
 0x7d5   :  { %v668_v4 = vrot.slane %v666_v9, 2 }
 0x7d7   :  { %669 = vrot.lane.b32.xlu1 %v668_v4, %s2010_s9 }
 0x849   :  { %v670_v11 = vpop.permute.xlu1 %669 }
 0x84a   :  { %1777 = vmatmul.mubr.msk.bf16.vlgmr.msra.gmra.mrb[16].mxu1 %vm399_vm7, %v670_v11  ;;  %1785 = vmatmul.mubr.msk.bf16.vlgmr.msra.gmra.mrb[12].mxu0 %vm399_vm7, %v670_v11 }
 0x84b   :  { %1789 = vmatpush3.bf16.msra.mxu1 %v2164_v36  ;;  %1797 = vmatpush3.bf16.msra.mxu0 %v2129_v25 }
 0x84c   :  { %1790 = vmatprep.subr.bf16.mxu1 %v2008_v10  ;;  %1798 = vmatprep.subr.bf16.mxu0 %v2008_v10 }
 0x84d   :  { %1792 = vmatprep.mubr.msk.bf16.mxu1 %vm2009_vm6, %v2008_v10  ;;  %1800 = vmatprep.mubr.msk.bf16.mxu0 %vm2009_vm6, %v2008_v10 }
 0x84f   :  { %1791 = vmatpush3.bf16.msra.mxu1 %v2170_v37  ;;  %1799 = vmatpush3.bf16.msra.mxu0 %v2136_v26 }
 0x850   :  { %1804 = vmatprep.subr.bf16.mxu1 %v2008_v10  ;;  %1812 = vmatprep.subr.bf16.mxu0 %v2008_v10 }
 0x91d   :  { %v708_v12 = vpop.f32.mrb[16].mxu1  ;;  %v748_v13 = vpop.f32.mrb[12].mxu0 }
 0x91e   :  { %v754_v14 = vsel %vm384_vm13, %v708_v12, %v748_v13  ;;  %v1778_v15 = vpop.f32.mrb[17].mxu1  ;;  %v1786_v16 = vpop.f32.mrb[13].mxu0 }
 0x91f   :  { %v762_v17 = vadd.f32 %v754_v14, %v2206_v8  ;;  %v711_v18 = vpop.f32.mrb[18].mxu1  ;;  %v751_v19 = vpop.f32.mrb[14].mxu0  ;;  %v755_v22 = vadd.f32 %v754_v14, %v2203_v7 }
 0x920   :  { %v1779_v20 = vpop.f32.mrb[19].mxu1  ;;  %v1787_v21 = vpop.f32.mrb[15].mxu0 }
 0x921   :  { %764 = vrot.lane.b32.xlu0 %v762_v17, %s2010_s9  ;;  %v1627_v23 = vmul.f32 -1.442695, %v755_v22 }
 0x923   :  { %1921 = vpow2.f32 %v1627_v23 }
 0x92d   :  { %v1922_v24 = vpop.eup %1921 }
 0x92e   :  { %v759_v28 = vadd.f32 1.0, %v1922_v24 }
 0x930   :  { %1923 = vrcp.f32 %v759_v28 }
 0x93a   :  { %v1924_v29 = vpop.eup %1923 }
 0x993   :  { %v765_v30 = vpop.permute.xlu0 %764 }
 0x994   :  { %v767_v31 = vmul.f32 %v1924_v29, %v765_v30 }
 0x996   :  { %769 = vrot.lane.b32.xlu1 %v767_v31, %s2010_s9 }
 0xa08   :  { %v770_v32 = vpop.permute.xlu1 %769 }
 0xa09   :  { %v772_v33 = vadd.f32 %v770_v32, %v2203_v7 }
 0xa0b   :  { %1925 = vtanh.f32 %v772_v33 }
 0xa15   :  { %v1926_v35 = vpop.eup %1925 }
 0xa16   :  { %v775_v38 = vrot.slane %v1926_v35, 4 }
 0xa18   :  { %v777_v27 = vsub.f32 %v2248_v5, %v775_v38 }
 0xa1a   :  { %v779_v39 = vrot.slane %v777_v27, 4 }
 0xa1c   :  { %780 = vrot.lane.b32.xlu0 %v779_v39, %s2012_s5 }
 0xa8e   :  { %v781_v40 = vpop.permute.xlu0 %780 }
 0xa8f   :  { %v783_v41 = vmul.f32 %v1924_v29, %v781_v40 }
 0xa91   :  { %785 = vrot.lane.b32.xlu1 %v783_v41, %s2011_s4 }
 0xb03   :  { %v786_v43 = vpop.permute.xlu1 %785 }
 0xb04   :  { %v2277_v44 = vadd.f32 %v1926_v35, %v786_v43 }
 0xb06   :  { %v790_v45 = vpack.c.bf16 %v2277_v44, %v2277_v44 }
 0xb08   :  { %792 = vrot.lane.b32.xlu0 %v790_v45, %s2010_s9 }
 0xb7a   :  { %v793_v46 = vpop.permute.xlu0 %792 }
 0xb7b   :  { %1793 = vmatmul.mubr.msk.bf16.vlgmr.msra.gmra.mrb[20].mxu1 %vm399_vm7, %v793_v46  ;;  %1801 = vmatmul.mubr.msk.bf16.vlgmr.msra.gmra.mrb[16].mxu0 %vm399_vm7, %v793_v46 }
 0xb7c   :  { %1805 = vmatpush3.bf16.msra.mxu1 %v2164_v36  ;;  %1813 = vmatpush3.bf16.msra.mxu0 %v2129_v25 }
 0xb7d   :  { %1806 = vmatprep.subr.bf16.mxu1 %v2008_v10  ;;  %1814 = vmatprep.subr.bf16.mxu0 %v2008_v10 }
 0xb7e   :  { %1808 = vmatprep.mubr.msk.bf16.mxu1 %vm2009_vm6, %v2008_v10  ;;  %1816 = vmatprep.mubr.msk.bf16.mxu0 %vm2009_vm6, %v2008_v10 }
 0xb80   :  { %1807 = vmatpush3.bf16.msra.mxu1 %v2170_v37  ;;  %1815 = vmatpush3.bf16.msra.mxu0 %v2136_v26 }
 0xb81   :  { %1820 = vmatprep.subr.bf16.mxu1 %v2008_v10  ;;  %1828 = vmatprep.subr.bf16.mxu0 %v2008_v10 }
 0xc4e   :  { %v831_v47 = vpop.f32.mrb[20].mxu1  ;;  %v871_v48 = vpop.f32.mrb[16].mxu0 }
 0xc4f   :  { %v877_v49 = vsel %vm384_vm13, %v831_v47, %v871_v48  ;;  %v1794_v50 = vpop.f32.mrb[21].mxu1  ;;  %v1802_v51 = vpop.f32.mrb[17].mxu0 }
 0xc50   :  { %v888_v52 = vadd.f32 %v877_v49, %v2206_v8  ;;  %v834_v53 = vpop.f32.mrb[22].mxu1  ;;  %v874_v54 = vpop.f32.mrb[18].mxu0  ;;  %v879_v58 = vrot.slane %v877_v49, 4 }
 0xc51   :  { %v1795_v55 = vpop.f32.mrb[23].mxu1  ;;  %v1803_v56 = vpop.f32.mrb[19].mxu0 }
 0xc52   :  { %v890_v57 = vrot.slane %v888_v52, 4  ;;  %v881_v59 = vadd.f32 %v879_v58, %v2203_v7 }
 0xc54   :  { %891 = vrot.lane.b32.xlu1 %v890_v57, %s2010_s9  ;;  %v1630_v60 = vmul.f32 -1.442695, %v881_v59 }
 0xc56   :  { %1927 = vpow2.f32 %v1630_v60 }
 0xc60   :  { %v1928_v61 = vpop.eup %1927 }
 0xc61   :  { %v885_v62 = vadd.f32 1.0, %v1928_v61 }
 0xc63   :  { %1929 = vrcp.f32 %v885_v62 }
 0xc6d   :  { %v1930_v63 = vpop.eup %1929 }
 0xcc6   :  { %v892_v0 = vpop.permute.xlu1 %891 }
 0xcc7   :  { %v894_v2 = vmul.f32 %v1930_v63, %v892_v0 }
 0xcc9   :  { %896 = vrot.lane.b32.xlu0 %v894_v2, %s2010_s9 }
 0xd3b   :  { %v897_v3 = vpop.permute.xlu0 %896 }
 0xd3c   :  { %v899_v9 = vadd.f32 %v897_v3, %v2203_v7 }
 0xd3e   :  { %1931 = vtanh.f32 %v899_v9 }
 0xd48   :  { %v1932_v4 = vpop.eup %1931 }
 0xd49   :  { %v902_v11 = vrot.slane %v1932_v4, 4 }
 0xd4b   :  { %v904_v12 = vsub.f32 %v2277_v44, %v902_v11 }
 0xd4d   :  { %v906_v13 = vrot.slane %v904_v12, 4 }
 0xd4f   :  { %907 = vrot.lane.b32.xlu1 %v906_v13, %s2012_s5 }
 0xdc1   :  { %v908_v14 = vpop.permute.xlu1 %907 }
 0xdc2   :  { %v910_v15 = vmul.f32 %v1930_v63, %v908_v14 }
 0xdc4   :  { %912 = vrot.lane.b32.xlu0 %v910_v15, %s2011_s4 }
 0xe36   :  { %v913_v16 = vpop.permute.xlu0 %912 }
 0xe37   :  { %v2306_v17 = vadd.f32 %v1932_v4, %v913_v16 }
 0xe39   :  { %v920_v18 = vpack.c.bf16 %v2306_v17, %v2306_v17 }
 0xe3b   :  { %v922_v19 = vrot.slane %v920_v18, 2 }
 0xe3d   :  { %923 = vrot.lane.b32.xlu1 %v922_v19, %s2010_s9 }
 0xeaf   :  { %v924_v7 = vpop.permute.xlu1 %923 }
 0xeb0   :  { %1809 = vmatmul.mubr.msk.bf16.vlgmr.msra.gmra.mrb[24].mxu1 %vm399_vm7, %v924_v7  ;;  %1817 = vmatmul.mubr.msk.bf16.vlgmr.msra.gmra.mrb[20].mxu0 %vm399_vm7, %v924_v7 }
 0xeb1   :  { %1821 = vmatpush3.bf16.msra.mxu1 %v2164_v36  ;;  %1829 = vmatpush3.bf16.msra.mxu0 %v2129_v25 }
 0xeb2   :  { %1822 = vmatprep.subr.bf16.mxu1 %v2008_v10  ;;  %1830 = vmatprep.subr.bf16.mxu0 %v2008_v10 }
 0xeb3   :  { %1824 = vmatprep.mubr.msk.bf16.mxu1 %vm2009_vm6, %v2008_v10  ;;  %1832 = vmatprep.mubr.msk.bf16.mxu0 %vm2009_vm6, %v2008_v10 }
 0xeb5   :  { %1823 = vmatpush3.bf16.msra.mxu1 %v2170_v37  ;;  %1831 = vmatpush3.bf16.msra.mxu0 %v2136_v26 }
 0xeb6   :  { %1836 = vmatprep.subr.bf16.mxu1 %v2008_v10  ;;  %1844 = vmatprep.subr.bf16.mxu0 %v2008_v10 }
 0xf83   :  { %v962_v20 = vpop.f32.mrb[24].mxu1  ;;  %v1002_v21 = vpop.f32.mrb[20].mxu0 }
 0xf84   :  { %v1008_v22 = vsel %vm384_vm13, %v962_v20, %v1002_v21  ;;  %v1810_v23 = vpop.f32.mrb[25].mxu1  ;;  %v1818_v24 = vpop.f32.mrb[21].mxu0 }
 0xf85   :  { %v1016_v28 = vadd.f32 %v1008_v22, %v2206_v8  ;;  %v965_v29 = vpop.f32.mrb[26].mxu1  ;;  %v1005_v30 = vpop.f32.mrb[22].mxu0  ;;  %v1009_v33 = vadd.f32 %v1008_v22, %v2197_v1 }
 0xf86   :  { %v1811_v31 = vpop.f32.mrb[27].mxu1  ;;  %v1819_v32 = vpop.f32.mrb[23].mxu0 }
 0xf87   :  { %1018 = vrot.lane.b32.xlu0 %v1016_v28, %s2010_s9  ;;  %v1633_v35 = vmul.f32 -1.442695, %v1009_v33 }
 0xf89   :  { %1933 = vpow2.f32 %v1633_v35 }
 0xf93   :  { %v1934_v38 = vpop.eup %1933 }
 0xf94   :  { %v1013_v27 = vadd.f32 1.0, %v1934_v38 }
 0xf96   :  { %1935 = vrcp.f32 %v1013_v27 }
 0xfa0   :  { %v1936_v39 = vpop.eup %1935 }
 0xff9   :  { %v1019_v40 = vpop.permute.xlu0 %1018 }
 0xffa   :  { %v1021_v41 = vmul.f32 %v1936_v39, %v1019_v40 }
 0xffc   :  { %1023 = vrot.lane.b32.xlu1 %v1021_v41, %s2010_s9 }
0x106e   :  { %v1024_v43 = vpop.permute.xlu1 %1023 }
0x106f   :  { %v1026_v45 = vadd.f32 %v1024_v43, %v2197_v1 }
0x1071   :  { %1937 = vtanh.f32 %v1026_v45 }
0x107b   :  { %v1938_v46 = vpop.eup %1937 }
0x107c   :  { %v1029_v47 = vrot.slane %v1938_v46, 4 }
0x107e   :  { %v1031_v48 = vsub.f32 %v2306_v17, %v1029_v47 }
0x1080   :  { %v1033_v49 = vrot.slane %v1031_v48, 4 }
0x1082   :  { %1034 = vrot.lane.b32.xlu0 %v1033_v49, %s2012_s5 }
0x10f4   :  { %v1035_v50 = vpop.permute.xlu0 %1034 }
0x10f5   :  { %v1037_v51 = vmul.f32 %v1936_v39, %v1035_v50 }
0x10f7   :  { %1039 = vrot.lane.b32.xlu1 %v1037_v51, %s2011_s4 }
0x1169   :  { %v1040_v52 = vpop.permute.xlu1 %1039 }
0x116a   :  { %v2335_v53 = vadd.f32 %v1938_v46, %v1040_v52 }
0x116c   :  { %v1044_v54 = vpack.c.bf16 %v2335_v53, %v2335_v53 }
0x116e   :  { %1046 = vrot.lane.b32.xlu0 %v1044_v54, %s2010_s9 }
0x11e0   :  { %v1047_v55 = vpop.permute.xlu0 %1046 }
0x11e1   :  { %1825 = vmatmul.mubr.msk.bf16.vlgmr.msra.gmra.mrb[28].mxu1 %vm399_vm7, %v1047_v55  ;;  %1833 = vmatmul.mubr.msk.bf16.vlgmr.msra.gmra.mrb[24].mxu0 %vm399_vm7, %v1047_v55 }
0x11e2   :  { %1837 = vmatpush3.bf16.msra.mxu1 %v2164_v36  ;;  %1845 = vmatpush3.bf16.msra.mxu0 %v2129_v25 }
0x11e3   :  { %1838 = vmatprep.subr.bf16.mxu1 %v2008_v10  ;;  %1846 = vmatprep.subr.bf16.mxu0 %v2008_v10 }
0x11e4   :  { %1840 = vmatprep.mubr.msk.bf16.mxu1 %vm2009_vm6, %v2008_v10  ;;  %1848 = vmatprep.mubr.msk.bf16.mxu0 %vm2009_vm6, %v2008_v10 }
0x11e6   :  { %1839 = vmatpush3.bf16.msra.mxu1 %v2170_v37  ;;  %1847 = vmatpush3.bf16.msra.mxu0 %v2136_v26 }
0x11e7   :  { %1852 = vmatprep.subr.bf16.mxu1 %v2008_v10  ;;  %1860 = vmatprep.subr.bf16.mxu0 %v2008_v10 }
0x12b4   :  { %v1085_v56 = vpop.f32.mrb[28].mxu1  ;;  %v1125_v57 = vpop.f32.mrb[24].mxu0 }
0x12b5   :  { %v1131_v58 = vsel %vm384_vm13, %v1085_v56, %v1125_v57  ;;  %v1826_v59 = vpop.f32.mrb[29].mxu1  ;;  %v1834_v60 = vpop.f32.mrb[25].mxu0 }
0x12b6   :  { %v1142_v61 = vadd.f32 %v1131_v58, %v2206_v8  ;;  %v1088_v62 = vpop.f32.mrb[30].mxu1  ;;  %v1128_v63 = vpop.f32.mrb[26].mxu0  ;;  %v1133_v9 = vrot.slane %v1131_v58, 4 }
0x12b7   :  { %v1827_v0 = vpop.f32.mrb[31].mxu1  ;;  %v1835_v2 = vpop.f32.mrb[27].mxu0 }
0x12b8   :  { %v1144_v3 = vrot.slane %v1142_v61, 4  ;;  %v1135_v4 = vadd.f32 %v1133_v9, %v2197_v1 }
0x12ba   :  { %1145 = vrot.lane.b32.xlu1 %v1144_v3, %s2010_s9  ;;  %v1636_v11 = vmul.f32 -1.442695, %v1135_v4 }
0x12bc   :  { %1939 = vpow2.f32 %v1636_v11 }
0x12c6   :  { %v1940_v12 = vpop.eup %1939 }
0x12c7   :  { %v1139_v13 = vadd.f32 1.0, %v1940_v12 }
0x12c9   :  { %1941 = vrcp.f32 %v1139_v13 }
0x12d3   :  { %v1942_v14 = vpop.eup %1941 }
0x132c   :  { %v1146_v15 = vpop.permute.xlu1 %1145 }
0x132d   :  { %v1148_v16 = vmul.f32 %v1942_v14, %v1146_v15 }
0x132f   :  { %1150 = vrot.lane.b32.xlu0 %v1148_v16, %s2010_s9 }
0x13a1   :  { %v1151_v18 = vpop.permute.xlu0 %1150 }
0x13a2   :  { %v1153_v19 = vadd.f32 %v1151_v18, %v2197_v1 }
0x13a4   :  { %1943 = vtanh.f32 %v1153_v19 }
0x13ae   :  { %v1944_v7 = vpop.eup %1943 }
0x13af   :  { %v1156_v20 = vrot.slane %v1944_v7, 4 }
0x13b1   :  { %v1158_v21 = vsub.f32 %v2335_v53, %v1156_v20 }
0x13b3   :  { %v1160_v22 = vrot.slane %v1158_v21, 4 }
0x13b5   :  { %1161 = vrot.lane.b32.xlu1 %v1160_v22, %s2012_s5 }
0x1427   :  { %v1162_v23 = vpop.permute.xlu1 %1161 }
0x1428   :  { %v1164_v24 = vmul.f32 %v1942_v14, %v1162_v23 }
0x142a   :  { %1166 = vrot.lane.b32.xlu0 %v1164_v24, %s2011_s4 }
0x149c   :  { %v1167_v28 = vpop.permute.xlu0 %1166 }
0x149d   :  { %v2364_v29 = vadd.f32 %v1944_v7, %v1167_v28 }
0x149f   :  { %v1174_v30 = vpack.c.bf16 %v2364_v29, %v2364_v29 }
0x14a1   :  { %v1176_v31 = vrot.slane %v1174_v30, 2 }
0x14a3   :  { %1177 = vrot.lane.b32.xlu1 %v1176_v31, %s2010_s9 }
0x1515   :  { %v1178_v1 = vpop.permute.xlu1 %1177 }
0x1516   :  { %1841 = vmatmul.mubr.msk.bf16.vlgmr.msra.gmra.mrb[32].mxu1 %vm399_vm7, %v1178_v1  ;;  %1849 = vmatmul.mubr.msk.bf16.vlgmr.msra.gmra.mrb[28].mxu0 %vm399_vm7, %v1178_v1 }
0x1517   :  { %1853 = vmatpush3.bf16.msra.mxu1 %v2164_v36  ;;  %1861 = vmatpush3.bf16.msra.mxu0 %v2129_v25 }
0x1518   :  { %1854 = vmatprep.subr.bf16.mxu1 %v2008_v10  ;;  %1862 = vmatprep.subr.bf16.mxu0 %v2008_v10 }
0x1519   :  { %1856 = vmatprep.mubr.msk.bf16.mxu1 %vm2009_vm6, %v2008_v10  ;;  %1864 = vmatprep.mubr.msk.bf16.mxu0 %vm2009_vm6, %v2008_v10 }
0x151b   :  { %1855 = vmatpush3.bf16.msra.mxu1 %v2170_v37  ;;  %1863 = vmatpush3.bf16.msra.mxu0 %v2136_v26 }
0x151c   :  { %1876 = vmatprep.subr.bf16.mxu0 %v2008_v10  ;;  %1868 = vmatprep.subr.bf16.mxu1 %v2008_v10 }
0x15e9   :  { %v1216_v36 = vpop.f32.mrb[32].mxu1  ;;  %v1256_v25 = vpop.f32.mrb[28].mxu0 }
0x15ea   :  { %v1262_v32 = vsel %vm384_vm13, %v1216_v36, %v1256_v25  ;;  %v1842_v33 = vpop.f32.mrb[33].mxu1  ;;  %v1850_v35 = vpop.f32.mrb[29].mxu0  ;;  %v1905_v36 = vld [vmem:[%s2477_s10] sm:$0xff]   ;;  %v1907_v25 = vld [vmem:[%s2477_s10 + $0x8] sm:$0xff]   ;;  %s2013_s10 = smov [#allocation4]  }
0x15eb   :  { %v1270_v38 = vadd.f32 %v1262_v32, %v2206_v8  ;;  %v1219_v27 = vpop.f32.mrb[34].mxu1  ;;  %v1259_v39 = vpop.f32.mrb[30].mxu0  ;;  %v1263_v26 = vadd.f32 %v1262_v32, %v2201_v6  ;;  %v1908_v32 = vld [vmem:[%s2478_s11 + $0x8] sm:$0xff]   ;;  %v663_v33 = vrot.slane %v2248_v5, 4 }
0x15ec   :  { %v1843_v40 = vpop.f32.mrb[35].mxu1  ;;  %v1851_v41 = vpop.f32.mrb[31].mxu0 }
0x15ed   :  { %1272 = vrot.lane.b32.xlu0 %v1270_v38, %s2010_s9  ;;  %v1639_v37 = vmul.f32 -1.442695, %v1263_v26  ;;  %v665_v35 = vmax.f32 %v2219_v34, %v663_v33  ;;  %v917_v38 = vrot.slane %v2306_v17, 4  ;;  %v1171_v40 = vrot.slane %v2364_v29, 4 }
0x15ef   :  { %1945 = vpow2.f32 %v1639_v37  ;;  %v789_v27 = vmax.f32 %v665_v35, %v2277_v44 }
0x15f1   :  { %v919_v39 = vmax.f32 %v789_v27, %v917_v38 }
0x15f3   :  { %v1043_v41 = vmax.f32 %v919_v39, %v2335_v53 }
0x15f5   :  { %v1173_v37 = vmax.f32 %v1043_v41, %v1171_v40 }
0x15f9   :  { %v1946_v43 = vpop.eup %1945 }
0x15fa   :  { %v1267_v45 = vadd.f32 1.0, %v1946_v43 }
0x15fc   :  { %1947 = vrcp.f32 %v1267_v45 }
0x1606   :  { %v1948_v46 = vpop.eup %1947 }
0x165f   :  { %v1273_v47 = vpop.permute.xlu0 %1272 }
0x1660   :  { %v1275_v48 = vmul.f32 %v1948_v46, %v1273_v47 }
0x1662   :  { %1277 = vrot.lane.b32.xlu1 %v1275_v48, %s2010_s9 }
0x16d4   :  { %v1278_v49 = vpop.permute.xlu1 %1277 }
0x16d5   :  { %v1280_v50 = vadd.f32 %v1278_v49, %v2201_v6 }
0x16d7   :  { %1949 = vtanh.f32 %v1280_v50 }
0x16e1   :  { %v1950_v51 = vpop.eup %1949 }
0x16e2   :  { %v1283_v52 = vrot.slane %v1950_v51, 4 }
0x16e4   :  { %v1285_v54 = vsub.f32 %v2364_v29, %v1283_v52 }
0x16e6   :  { %v1287_v55 = vrot.slane %v1285_v54, 4 }
0x16e8   :  { %1288 = vrot.lane.b32.xlu0 %v1287_v55, %s2012_s5 }
0x175a   :  { %v1289_v56 = vpop.permute.xlu0 %1288 }
0x175b   :  { %v1291_v57 = vmul.f32 %v1948_v46, %v1289_v56 }
0x175d   :  { %1293 = vrot.lane.b32.xlu1 %v1291_v57, %s2011_s4 }
0x17cf   :  { %v1294_v58 = vpop.permute.xlu1 %1293 }
0x17d0   :  { %v2393_v59 = vadd.f32 %v1950_v51, %v1294_v58 }
0x17d2   :  { %v1298_v60 = vpack.c.bf16 %v2393_v59, %v2393_v59 }
0x17d4   :  { %1300 = vrot.lane.b32.xlu0 %v1298_v60, %s2010_s9 }
0x1846   :  { %v1301_v61 = vpop.permute.xlu0 %1300 }
0x1847   :  { %1857 = vmatmul.mubr.msk.bf16.vlgmr.msra.gmra.mrb[36].mxu1 %vm399_vm7, %v1301_v61  ;;  %1865 = vmatmul.mubr.msk.bf16.vlgmr.msra.gmra.mrb[32].mxu0 %vm399_vm7, %v1301_v61 }
0x1848   :  { %1880 = vmatprep.mubr.msk.bf16.mxu0 %vm2009_vm6, %v2008_v10  ;;  %1872 = vmatprep.mubr.msk.bf16.mxu1 %vm2009_vm6, %v2008_v10 }
0x1849   :  { %1877 = vmatpush3.bf16.msra.mxu0 %v1905_v36 }
0x184a   :  { %1878 = vmatprep.subr.bf16.mxu0 %v2008_v10 }
0x184d   :  { %1879 = vmatpush3.bf16.msra.mxu0 %v1907_v25 }
0x191a   :  { %v1339_v62 = vpop.f32.mrb[36].mxu1  ;;  %v1379_v63 = vpop.f32.mrb[32].mxu0 }
0x191b   :  { %v1385_v0 = vsel %vm384_vm13, %v1339_v62, %v1379_v63  ;;  %v1858_v2 = vpop.f32.mrb[37].mxu1  ;;  %v1866_v3 = vpop.f32.mrb[33].mxu0 }
0x191c   :  { %v1396_v9 = vadd.f32 %v1385_v0, %v2206_v8  ;;  %v1342_v4 = vpop.f32.mrb[38].mxu1  ;;  %v1382_v11 = vpop.f32.mrb[34].mxu0  ;;  %v1387_v15 = vrot.slane %v1385_v0, 4 }
0x191d   :  { %v1859_v12 = vpop.f32.mrb[39].mxu1  ;;  %v1867_v13 = vpop.f32.mrb[35].mxu0 }
0x191e   :  { %v1398_v14 = vrot.slane %v1396_v9, 4  ;;  %v1389_v16 = vadd.f32 %v1387_v15, %v2201_v6 }
0x1920   :  { %1399 = vrot.lane.b32.xlu1 %v1398_v14, %s2010_s9  ;;  %v1642_v18 = vmul.f32 -1.442695, %v1389_v16 }
0x1922   :  { %1951 = vpow2.f32 %v1642_v18 }
0x192c   :  { %v1952_v19 = vpop.eup %1951 }
0x192d   :  { %v1393_v7 = vadd.f32 1.0, %v1952_v19 }
0x192f   :  { %1953 = vrcp.f32 %v1393_v7 }
0x1939   :  { %v1954_v42 = vpop.eup %1953 }
0x1992   :  { %v1400_v20 = vpop.permute.xlu1 %1399 }
0x1993   :  { %v1402_v21 = vmul.f32 %v1954_v42, %v1400_v20 }
0x1995   :  { %1404 = vrot.lane.b32.xlu0 %v1402_v21, %s2010_s9 }
0x1a07   :  { %v1405_v8 = vpop.permute.xlu0 %1404 }
0x1a08   :  { %v1407_v22 = vadd.f32 %v1405_v8, %v2201_v6  ;;  %v1906_v6 = vld [vmem:[%s2478_s11] sm:$0xff]   ;;  %s1585_s11 = sshll.u32 %s2013_s10, 4  ;;  %s1586_s11 = int_to_ptr.vmem [resolvable:$true] %s1585_s11 }
0x1a09   :  { %1869 = vmatpush3.bf16.msra.mxu1 %v1906_v6  ;;  %s1959_s16 = scalar_lea.vmem %s1586_s11, 64  ;;  %p1964_p1 = scmp.lt.s32.totalorder %s1586_s11, %s1586_s11 }
0x1a0a   :  { %1955 = vtanh.f32 %v1407_v22  ;;  %1870 = vmatprep.subr.bf16.mxu1 %v2008_v10  ;;  %v1297_v10 = vmax.f32 %v1173_v37, %v2393_v59  ;;  %p1960_p0 = scmp.ne.s32.totalorder %s1586_s11, %s1959_s16  ;;  %p1965_p2 = scmp.lt.s32.totalorder %s1959_s16, %s1959_s16 }
0x1a0c   :  { %p1966_p3 = por %p1965_p2, %p1964_p1 }
0x1a0d   :  { %1871 = vmatpush3.bf16.msra.mxu1 %v1908_v32 }
0x1a0e   :  { %p1967_p4 = pnand %p1966_p3, %p1960_p0 }
0x1a14   :  { %v1956_v23 = vpop.eup %1955 }
0x1a15   :  { %v1410_v24 = vrot.slane %v1956_v23, 4 }
0x1a17   :  { %v1412_v28 = vsub.f32 %v2393_v59, %v1410_v24 }
0x1a19   :  { %v1414_v30 = vrot.slane %v1412_v28, 4 }
0x1a1b   :  { %1415 = vrot.lane.b32.xlu1 %v1414_v30, %s2012_s5 }
0x1a8d   :  { %v1416_v31 = vpop.permute.xlu1 %1415 }
0x1a8e   :  { %v1418_v1 = vmul.f32 %v1954_v42, %v1416_v31 }
0x1a90   :  { %1420 = vrot.lane.b32.xlu0 %v1418_v1, %s2011_s4 }
0x1b02   :  { %v1421_v26 = vpop.permute.xlu0 %1420 }
0x1b03   :  { %v1423_v43 = vadd.f32 %v1956_v23, %v1421_v26 }
0x1b05   :  { %v1425_v45 = vrot.slane %v1423_v43, 4 }
0x1b07   :  { %v1427_v46 = vmax.f32 %v1297_v10, %v1425_v45 }
0x1b09   :  { %1957 = vtanh.f32 %v1427_v46 }
0x1b13   :  { %v1958_v5 = vpop.eup %1957 }
0x1b14   :  { %v1429_v47 = vpack.c.bf16 %v1958_v5, %v1958_v5 }
0x1b16   :  { %1497 = vrot.lane.b32.xlu0 %v1429_v47, %s2010_s9  ;;  %v1439_v34 = vrot.slane %v1429_v47, 1 }
0x1b18   :  { %1440 = vrot.lane.b32.xlu1 %v1439_v34, %s2010_s9 }
0x1b1c   :  { %1564 = vrot.lane.b32.xlu1 %v1423_v43, %s2010_s9 }
0x1b88   :  { %v1498_v44 = vpop.permute.xlu0 %1497 }
0x1b89   :  { %1881 = vmatmul.mubr.msk.bf16.vlgmr.msra.gmra.mrb[36].mxu0 %vm399_vm7, %v1498_v44 }
0x1b8a   :  { %v1441_v17 = vpop.permute.xlu1 %1440 }
0x1b8b   :  { %1873 = vmatmul.mubr.msk.bf16.vlgmr.msra.gmra.mrb[40].mxu1 %vm399_vm7, %v1441_v17 }
0x1b8e   :  { %v1565_v53 = vpop.permute.xlu1 %1564 }
0x1b8f   :  { %1568 = vst.msk [vmem:[#allocation4 - $0x4] sm:$0xf0] %vm1567_vm14, %v1565_v53 }
0x1b90   :  { %1970 = shalt.err (!%p1967_p4)
}
0x1b91   :  { %s1971_s2 = scalar_lea.hbm %s2481_s14, 64 }
0x1b92   :  { %p1972_p5 = scmp.ne.s32.totalorder %s2481_s14, %s1971_s2  ;;  %p1975_p6 = scmp.lt.u32.totalorder %s1971_s2, %s2481_s14 }
0x1b94   :  { %p1977_p7 = pnand %p1975_p6, %p1972_p5 }
0x1b96   :  { %1980 = shalt.err (!%p1977_p7)
}
0x1b97   :  { %1588 = dma.vmem_to_hbm [thread:$0]  %s1586_s11, 64, %s2481_s14, [#allocation5]   ;;  %v1649_v51 = vld [vmem:[%s2479_s12] ss:$0 sm:$0xff]  ;;  %vm1562_vm15 = vcmask 25600  }
0x1b98   :  { %s2014_s6 = smov [#allocation2]  }
0x1b99   :  { %s1575_s23 = sshll.u32 %s2014_s6, 4  ;;  %s1576_s23 = int_to_ptr.vmem [resolvable:$true] %s1575_s23 }
0x1b9a   :  { %s1981_s14 = scalar_lea.vmem %s1576_s23, 32  ;;  %p1986_p9 = scmp.lt.s32.totalorder %s1576_s23, %s1576_s23 }
0x1b9b   :  { %p1982_p8 = scmp.ne.s32.totalorder %s1576_s23, %s1981_s14  ;;  %p1987_p10 = scmp.lt.s32.totalorder %s1981_s14, %s1981_s14 }
0x1b9d   :  { %p1988_p11 = por %p1987_p10, %p1986_p9 }
0x1b9f   :  { %p1989_p12 = pnand %p1988_p11, %p1982_p8 }
0x1c5c   :  { %v1548_v29 = vpop.f32.mrb[36].mxu0 }
0x1c5d   :  { %v1882_v48 = vpop.f32.mrb[37].mxu0 }
0x1c5e   :  { %v1491_v49 = vpop.f32.mrb[40].mxu1  ;;  %v1551_v50 = vpop.f32.mrb[38].mxu0 }
0x1c5f   :  { %v1549_v52 = vadd.f32 %v1548_v29, %v1491_v49  ;;  %v1874_v54 = vpop.f32.mrb[41].mxu1  ;;  %v1883_v55 = vpop.f32.mrb[39].mxu0 }
0x1c60   :  { %v1494_v56 = vpop.f32.mrb[42].mxu1 }
0x1c61   :  { %v1875_v57 = vpop.f32.mrb[43].mxu1  ;;  %v1561_v58 = vadd.f32 %v1649_v51, %v1549_v52 }
0x1c63   :  { %1563 = vst.msk [vmem:[#allocation2] sm:$0x3] %vm1562_vm15, %v1561_v58 }
0x1c64   :  { %1992 = shalt.err (!%p1989_p12)
}
0x1c65   :  { %s1993_s25 = scalar_lea.hbm %s2480_s13, 32 }
0x1c66   :  { %p1994_p13 = scmp.ne.s32.totalorder %s2480_s13, %s1993_s25  ;;  %p1997_p0 = scmp.lt.u32.totalorder %s1993_s25, %s2480_s13 }
0x1c68   :  { %p1999_p1 = pnand %p1997_p0, %p1994_p13 }
0x1c6a   :  { %2002 = shalt.err (!%p1999_p1)
}
0x1c6b   :  { %1578 = dma.vmem_to_hbm [thread:$0]  %s1576_s23, 32, %s2480_s13, [#allocation3]  }
0x1c6c   :  { %2003 = dma.done.wait [#allocation3], 32  }
0x1c6d   :  { %2004 = vsyncadd [#allocation3], 4294967264 }
0x1c6e   :  { %2005 = dma.done.wait [#allocation5], 64  }
0x1c6f   :  { %2006 = vsyncadd [#allocation5], 4294967232 }
0x1c70   :  { %1595 = vsyncpa [#allocation3], 1 }
0x1c71   :  { %1596 = vsyncpa [#allocation5], 1 }

</bundles_post_ra>
